<compile_context>
chip_gen: v6e
topology: v6e:2x2x1
jax: 0.10.0
libtpu: 0.0.40
codegen_flags: <defaults>
</compile_context>

<pallas_src>
import functools

import jax
import jax.numpy as jnp
from jax.experimental import pallas as pl
from jax.experimental.pallas import tpu as pltpu

_EPS = 1e-6  # NormalizeLayer eps (added to std, matching the PyTorch module)
_MASK_NEG = -1e30  # finite "-inf" so fully-masked rows give uniform attn, not NaN


def _layer_norm(z, alpha, beta, *, d, eps):
    """torch NormalizeLayer: alpha * (z - mean) / (std + eps) + beta.

    torch.std uses the unbiased estimator (divide by d - 1)."""
    mean = jnp.mean(z, axis=-1, keepdims=True)
    zc = z - mean
    var = jnp.sum(zc * zc, axis=-1, keepdims=True) * (1.0 / (d - 1))
    std = jnp.sqrt(var)
    return alpha * (zc / (std + eps)) + beta


def _encoder_block_kernel(
    x_ref, mask_ref,
    wqkv_ref, bqkv_ref, wo_ref, bo_ref,
    w1_ref, b1_ref, w2_ref, b2_ref, norm_ref,
    o_ref, xb_ref, acc_ref, *, kd, d_model, eps):
  """Grid = (batch, head). One head's attention per step; epilogue on last head."""
  h = pl.program_id(1)

  @pl.when(h == 0)
  def _():
    # Hoisted once per batch element: bf16 feed for the MXU + zeroed Wo acc.
    xb_ref[...] = x_ref[0].astype(jnp.bfloat16)
    acc_ref[...] = jnp.zeros_like(acc_ref)

  xb = xb_ref[...]                                   # (S, D) bf16

  # Fused per-head QKV projection: (S, D) @ (D, 3*kd), f32 accumulation.
  # Weights are resident full arrays; ref[h] is a cheap leading-dim select.
  # 1/sqrt(kd) is already folded into the Wq/bq columns host-side.
  qkv = jnp.dot(xb, wqkv_ref[h], preferred_element_type=jnp.float32) + bqkv_ref[h]
  q = qkv[:, 0:kd]
  k = qkv[:, kd:2 * kd]
  v = qkv[:, 2 * kd:3 * kd]

  # Q K^T without an explicit transpose: contract the last dim of both.
  s = jax.lax.dot_general(
      q.astype(jnp.bfloat16), k.astype(jnp.bfloat16),
      dimension_numbers=(((1,), (1,)), ((), ())),
      preferred_element_type=jnp.float32)            # (S, S) f32

  # Additive key-padding bias (0 / -1e30), broadcast over query rows.
  s = s + mask_ref[0]

  # Numerically stable softmax in f32; exact reciprocal (EUP) for parity.
  s = s - jnp.max(s, axis=-1, keepdims=True)
  p = jnp.exp(s)
  p = p * pl.reciprocal(jnp.sum(p, axis=-1, keepdims=True), approx=False)

  ctx = jnp.dot(p.astype(jnp.bfloat16), v.astype(jnp.bfloat16),
                preferred_element_type=jnp.float32)  # (S, kd)

  # Fused output projection: this head's Wo row-block accumulated into (S, D).
  acc_ref[...] += jnp.dot(ctx.astype(jnp.bfloat16), wo_ref[h],
                          preferred_element_type=jnp.float32)

  # Finalize once per batch element: residual + norm + FFN + residual + norm.
  @pl.when(h == pl.num_programs(1) - 1)
  def _():
    x = x_ref[0]                                     # (S, D) f32 residual input
    alpha1 = norm_ref[0]
    beta1 = norm_ref[1]
    alpha2 = norm_ref[2]
    beta2 = norm_ref[3]

    attn = acc_ref[...] + bo_ref[...]                # Wo bias added once
    # TODO(synk): nn.Dropout is inference-mode identity here; train-mode
    # stochastic dropout (pltpu.prng_*) is not implemented.
    y1 = _layer_norm(x + attn, alpha1, beta1, d=d_model, eps=eps)

    # TODO(synk): for very long S / large D_ff on v7x, tile this FFN over
    # S-row chunks to bound the (S, D) hidden temporary.
    hid = jnp.dot(y1.astype(jnp.bfloat16), w1_ref[...],
                  preferred_element_type=jnp.float32) + b1_ref[...]
    hid = jnp.maximum(hid, 0.0)                      # ReLU
    ffn = jnp.dot(hid.astype(jnp.bfloat16), w2_ref[...],
                  preferred_element_type=jnp.float32) + b2_ref[...]

    y2 = _layer_norm(y1 + ffn, alpha2, beta2, d=d_model, eps=eps)
    o_ref[0] = y2.astype(o_ref.dtype)


def _vmem_limit_bytes():
  """Per-generation scoped-VMEM limit (review: don't hardcode 32 MiB)."""
  try:
    cap = int(pltpu.get_tpu_info().vmem_capacity_bytes)
  except Exception:
    cap = 64 * 1024 * 1024                           # conservative fallback
  # ~7/8 of physical, capped at 112 MiB (v5e/v6e) and ~56 MiB on v7x.
  return max(32 * 1024 * 1024, min(cap * 7 // 8, 112 * 1024 * 1024))


def encoder_block(x, mask, params, norm_params, *, head):
  """x: (B, S, D) f32.  mask: (B, S) key-validity vector (1=attend, 0=mask) or None.

  params: dict of torch-Linear weights (out, in) and biases.
  norm_params: (alpha1, bias1, alpha2, bias2) scalars of the two NormalizeLayers."""
  B, S, D = x.shape
  assert D % head == 0
  kd = D // head
  bf16, f32 = jnp.bfloat16, jnp.float32
  scale = 1.0 / float(jnp.sqrt(jnp.float32(kd)))

  # torch Linear stores (out, in); kernel wants (in, out) with output features
  # grouped per head: (head, D, kd).
  def head_in_proj(w):
    return jnp.transpose(w.T.reshape(D, head, kd), (1, 0, 2))

  def head_bias(b):
    return b.reshape(head, 1, kd)

  # Fused QKV weight/bias, with the softmax scale folded into the Q columns.
  wqkv = jnp.concatenate(
      [head_in_proj(params["Wq_w"]) * scale,
       head_in_proj(params["Wk_w"]),
       head_in_proj(params["Wv_w"])], axis=-1).astype(bf16)     # (head, D, 3kd)
  bqkv = jnp.concatenate(
      [head_bias(params["Wq_b"]) * scale,
       head_bias(params["Wk_b"]),
       head_bias(params["Wv_b"])], axis=-1).astype(f32)         # (head, 1, 3kd)

  wo = params["Wo_w"].T.reshape(head, kd, D).astype(bf16)       # (head, kd, D)
  bo = params["Wo_b"].reshape(1, D).astype(f32)
  w1 = params["L1_w"].T.astype(bf16)
  b1 = params["L1_b"].reshape(1, D).astype(f32)
  w2 = params["L2_w"].T.astype(bf16)
  b2 = params["L2_b"].reshape(1, D).astype(f32)

  # Key-padding mask -> tiny f32 additive bias (B, 1, S); no (B,S,S) DMA.
  # TODO(synk): general per-query / per-head (B, S, S) masks are not plumbed
  # through; they would be shipped as int8 blocks instead.
  if mask is None:
    mask_bias = jnp.zeros((B, 1, S), f32)
  else:
    key_mask = jnp.asarray(mask)
    assert key_mask.shape == (B, S), "mask must be a (B, S) key-validity vector"
    mask_bias = jnp.where(key_mask == 0, jnp.float32(_MASK_NEG),
                          jnp.float32(0.0)).reshape(B, 1, S).astype(f32)

  norm_vec = jnp.asarray(norm_params, dtype=f32).reshape(4)

  x_spec = pl.BlockSpec((1, S, D), lambda b, h: (b, 0, 0))
  mask_spec = pl.BlockSpec((1, 1, S), lambda b, h: (b, 0, 0))
  smem_spec = pl.BlockSpec(memory_space=pltpu.MemorySpace.SMEM)

  def const_spec(shape, single_buffer):
    # Constant index map -> DMA'd exactly once per call (resident weights).
    zero = (0,) * len(shape)
    index_map = lambda b, h, _z=zero: _z
    if single_buffer:
      # Never changes -> don't waste VMEM on a second pipeline buffer.
      return pl.BlockSpec(shape, index_map, pipeline_mode=pl.Buffered(1))
    return pl.BlockSpec(shape, index_map)

  kernel = functools.partial(_encoder_block_kernel, kd=kd, d_model=D, eps=_EPS)

  operands = (x, mask_bias, wqkv, bqkv, wo, bo, w1, b1, w2, b2, norm_vec)
  bytes_accessed = int(sum(int(a.size) * a.dtype.itemsize for a in operands)
                       + B * S * D * 4)
  flops = int(B * (12 * S * D * D + 4 * S * S * D))   # projections + attn + FFN
  transcendentals = int(B * head * S * S)             # softmax exp

  def build(single_buffer_weights):
    cs = lambda shape: const_spec(shape, single_buffer_weights)
    return pl.pallas_call(
        kernel,
        out_shape=jax.ShapeDtypeStruct((B, S, D), x.dtype),
        grid_spec=pltpu.PrefetchScalarGridSpec(
            num_scalar_prefetch=0,
            grid=(B, head),                            # head = reduction axis
            in_specs=[x_spec, mask_spec,
                      cs((head, D, 3 * kd)),           # fused Wqkv (resident)
                      cs((head, 1, 3 * kd)),           # fused bqkv
                      cs((head, kd, D)),               # Wo (resident)
                      cs((1, D)),                      # bo
                      cs((D, D)), cs((1, D)),          # FFN linear1
                      cs((D, D)), cs((1, D)),          # FFN linear2
                      smem_spec],                      # [a1, b1, a2, b2]
            out_specs=x_spec,
            scratch_shapes=[pltpu.VMEM((S, D), jnp.bfloat16),   # hoisted x cast
                            pltpu.VMEM((S, D), jnp.float32)]),  # Wo accumulator
        compiler_params=pltpu.CompilerParams(
            dimension_semantics=("parallel", "arbitrary"),
            vmem_limit_bytes=_vmem_limit_bytes()),
        cost_estimate=pl.CostEstimate(
            flops=flops, transcendentals=transcendentals,
            bytes_accessed=bytes_accessed),
    )

  try:
    return build(True)(*operands)
  except Exception:
    # pl.Buffered(1) single-buffering unavailable on this jax/libtpu combo:
    # fall back to default double-buffered constant blocks (correctness same).
    return build(False)(*operands)


def _reference_block(x, key_mask, params, norm_params, *, head):
  """Pure-JAX f32 reference mirroring the PyTorch forward (dropout = identity)."""
  B, S, D = x.shape
  kd = D // head
  a1, b1n, a2, b2n = [jnp.float32(v) for v in norm_params]
  lin = lambda t, w, b: t @ w.T + b

  def norm(z, alpha, beta):
    mean = jnp.mean(z, axis=-1, keepdims=True)
    std = jnp.std(z, axis=-1, keepdims=True, ddof=1)   # torch unbiased std
    return alpha * (z - mean) / (std + _EPS) + beta

  q = lin(x, params["Wq_w"], params["Wq_b"]).reshape(B, S, head, kd).transpose(0, 2, 1, 3)
  v = lin(x, params["Wv_w"], params["Wv_b"]).reshape(B, S, head, kd).transpose(0, 2, 1, 3)
  k = lin(x, params["Wk_w"], params["Wk_b"]).reshape(B, S, head, kd).transpose(0, 2, 1, 3)
  score = q @ k.transpose(0, 1, 3, 2) / jnp.sqrt(jnp.float32(kd))
  if key_mask is not None:
    score = jnp.where(key_mask[:, None, None, :] == 0, _MASK_NEG, score)
  p = jax.nn.softmax(score, axis=-1)
  ctx = (p @ v).transpose(0, 2, 1, 3).reshape(B, S, D)
  attn = lin(ctx, params["Wo_w"], params["Wo_b"])
  y1 = norm(x + attn, a1, b1n)
  ffn = lin(jax.nn.relu(lin(y1, params["L1_w"], params["L1_b"])),
            params["L2_w"], params["L2_b"])
  return norm(y1 + ffn, a2, b2n)


if __name__ == "__main__":
  B, S, D, H = 2, 8, 32, 4
  root = jax.random.PRNGKey(0)
  ks = jax.random.split(root, 16)

  params = {
      "Wq_w": jax.random.normal(ks[0], (D, D), jnp.float32) * 0.1,
      "Wq_b": jax.random.normal(ks[1], (D,), jnp.float32) * 0.1,
      "Wk_w": jax.random.normal(ks[2], (D, D), jnp.float32) * 0.1,
      "Wk_b": jax.random.normal(ks[3], (D,), jnp.float32) * 0.1,
      "Wv_w": jax.random.normal(ks[4], (D, D), jnp.float32) * 0.1,
      "Wv_b": jax.random.normal(ks[5], (D,), jnp.float32) * 0.1,
      "Wo_w": jax.random.normal(ks[6], (D, D), jnp.float32) * 0.1,
      "Wo_b": jax.random.normal(ks[7], (D,), jnp.float32) * 0.1,
      "L1_w": jax.random.normal(ks[8], (D, D), jnp.float32) * 0.1,
      "L1_b": jax.random.normal(ks[9], (D,), jnp.float32) * 0.1,
      "L2_w": jax.random.normal(ks[10], (D, D), jnp.float32) * 0.1,
      "L2_b": jax.random.normal(ks[11], (D,), jnp.float32) * 0.1,
  }
  norm_params = (1.25, -0.10, 0.80, 0.05)   # (alpha1, bias1, alpha2, bias2)

  x = jax.random.normal(ks[12], (B, S, D), jnp.float32)
  # Key-padding mask: batch 1 masks its last two key positions for all queries.
  mask = jnp.ones((B, S), jnp.int32).at[1, S - 2:].set(0)

  out = encoder_block(x, mask, params, norm_params, head=H)
  out = jax.block_until_ready(out)

  ref = _reference_block(x, mask, params, norm_params, head=H)
  assert out.shape == (B, S, D)
  max_err = float(jnp.max(jnp.abs(out - ref)))
  # bf16 MXU operands (f32 accumulation) -> small absolute error vs f32 reference.
  assert jnp.allclose(out, ref, atol=5e-2, rtol=5e-2), (
      f"mismatch vs reference (max |err| = {max_err})")
  print("KERNEL_OK")
</pallas_src>

<mosaic_0001>
module attributes {stable_mosaic.version = 11 : i64} {
  func.func @_encoder_block_kernel(%arg0: i32, %arg1: i32, %arg2: memref<1x8x32xf32, #tpu.memory_space<vmem>>, %arg3: memref<1x1x8xf32, #tpu.memory_space<vmem>>, %arg4: memref<4x32x24xbf16, #tpu.memory_space<vmem>>, %arg5: memref<4x1x24xf32, #tpu.memory_space<vmem>>, %arg6: memref<4x8x32xbf16, #tpu.memory_space<vmem>>, %arg7: memref<1x32xf32, #tpu.memory_space<vmem>>, %arg8: memref<32x32xbf16, #tpu.memory_space<vmem>>, %arg9: memref<1x32xf32, #tpu.memory_space<vmem>>, %arg10: memref<32x32xbf16, #tpu.memory_space<vmem>>, %arg11: memref<1x32xf32, #tpu.memory_space<vmem>>, %arg12: memref<4xf32, #tpu.memory_space<smem>>, %arg13: memref<1x8x32xf32, #tpu.memory_space<vmem>>, %arg14: memref<8x32xbf16, #tpu.memory_space<vmem>>, %arg15: memref<8x32xf32, #tpu.memory_space<vmem>>) attributes {dimension_semantics = [#tpu.dimension_semantics<parallel>, #tpu.dimension_semantics<arbitrary>], iteration_bounds = array<i64: 2, 4>, scalar_prefetch = 0 : i64, scratch_operands = 2 : i64, tpu.core_type = #tpu.core_type<tc>, window_params = [{transform_indices = @transform_0, window_bounds = array<i64: 1, 8, 32>}, {transform_indices = @transform_1, window_bounds = array<i64: 1, 1, 8>}, {pipeline_mode = #tpu.pipeline_mode<synchronous>, transform_indices = @transform_2, window_bounds = array<i64: 4, 32, 24>}, {pipeline_mode = #tpu.pipeline_mode<synchronous>, transform_indices = @transform_3, window_bounds = array<i64: 4, 1, 24>}, {pipeline_mode = #tpu.pipeline_mode<synchronous>, transform_indices = @transform_4, window_bounds = array<i64: 4, 8, 32>}, {pipeline_mode = #tpu.pipeline_mode<synchronous>, transform_indices = @transform_5, window_bounds = array<i64: 1, 32>}, {pipeline_mode = #tpu.pipeline_mode<synchronous>, transform_indices = @transform_6, window_bounds = array<i64: 32, 32>}, {pipeline_mode = #tpu.pipeline_mode<synchronous>, transform_indices = @transform_7, window_bounds = array<i64: 1, 32>}, {pipeline_mode = #tpu.pipeline_mode<synchronous>, transform_indices = @transform_8, window_bounds = array<i64: 32, 32>}, {pipeline_mode = #tpu.pipeline_mode<synchronous>, transform_indices = @transform_9, window_bounds = array<i64: 1, 32>}, {transform_indices = @transform_10, window_bounds = array<i64: 4>}, {transform_indices = @transform_11, window_bounds = array<i64: 1, 8, 32>}]} {
    %c0_i32 = arith.constant 0 : i32
    %0 = arith.cmpi eq, %arg1, %c0_i32 : i32
    %1 = arith.extui %0 : i1 to i32
    %c0_i32_0 = arith.constant 0 : i32
    %2 = arith.cmpi ne, %1, %c0_i32_0 : i32
    scf.if %2 {
      %c0_21 = arith.constant 0 : index
      %c0_22 = arith.constant 0 : index
      %c0_23 = arith.constant 0 : index
      %47 = vector.load %arg2[%c0_21, %c0_22, %c0_23] : memref<1x8x32xf32, #tpu.memory_space<vmem>>, vector<1x8x32xf32>
      %48 = vector.shape_cast %47 : vector<1x8x32xf32> to vector<8x32xf32>
      %49 = arith.truncf %48 : vector<8x32xf32> to vector<8x32xbf16>
      %c0_24 = arith.constant 0 : index
      %c0_25 = arith.constant 0 : index
      %50 = vector.load %arg14[%c0_24, %c0_25] : memref<8x32xbf16, #tpu.memory_space<vmem>>, vector<8x32xbf16>
      tpu.vector_store %arg14[%c0_24, %c0_25], %49 {strides = array<i32>} : memref<8x32xbf16, #tpu.memory_space<vmem>>, vector<8x32xbf16>,
      %cst_26 = arith.constant 0.000000e+00 : f32
      %51 = vector.broadcast %cst_26 : f32 to vector<8x32xf32>
      %c0_27 = arith.constant 0 : index
      %c0_28 = arith.constant 0 : index
      %52 = vector.load %arg15[%c0_27, %c0_28] : memref<8x32xf32, #tpu.memory_space<vmem>>, vector<8x32xf32>
      tpu.vector_store %arg15[%c0_27, %c0_28], %51 {strides = array<i32>} : memref<8x32xf32, #tpu.memory_space<vmem>>, vector<8x32xf32>,
    } else {
    }
    %c0 = arith.constant 0 : index
    %c0_1 = arith.constant 0 : index
    %3 = vector.load %arg14[%c0, %c0_1] : memref<8x32xbf16, #tpu.memory_space<vmem>>, vector<8x32xbf16>
    %4 = arith.index_cast %arg1 : i32 to index
    %c0_2 = arith.constant 0 : index
    %c0_3 = arith.constant 0 : index
    %5 = vector.load %arg4[%4, %c0_2, %c0_3] : memref<4x32x24xbf16, #tpu.memory_space<vmem>>, vector<1x32x24xbf16>
    %6 = vector.shape_cast %5 : vector<1x32x24xbf16> to vector<32x24xbf16>
    %cst = arith.constant dense<0.000000e+00> : vector<8x24xf32>
    %7 = tpu.matmul %3, %6, %cst {dimension_numbers = #tpu.dot_dimension_numbers<[1], [0], [0], [1], [0, 0, 1, 1], [], []>} : vector<8x32xbf16>, vector<32x24xbf16>, vector<8x24xf32> -> vector<8x24xf32>
    %8 = arith.index_cast %arg1 : i32 to index
    %c0_4 = arith.constant 0 : index
    %c0_5 = arith.constant 0 : index
    %9 = vector.load %arg5[%8, %c0_4, %c0_5] : memref<4x1x24xf32, #tpu.memory_space<vmem>>, vector<1x1x24xf32>
    %10 = vector.shape_cast %9 : vector<1x1x24xf32> to vector<1x24xf32>
    %11 = vector.broadcast %10 : vector<1x24xf32> to vector<8x24xf32>
    %12 = arith.addf %7, %11 : vector<8x24xf32>
    %13 = vector.extract_strided_slice %12 {offsets = [0, 0], sizes = [8, 8], strides = [1, 1]} : vector<8x24xf32> to vector<8x8xf32>
    %14 = vector.extract_strided_slice %12 {offsets = [0, 8], sizes = [8, 8], strides = [1, 1]} : vector<8x24xf32> to vector<8x8xf32>
    %15 = vector.extract_strided_slice %12 {offsets = [0, 16], sizes = [8, 8], strides = [1, 1]} : vector<8x24xf32> to vector<8x8xf32>
    %16 = arith.truncf %13 : vector<8x8xf32> to vector<8x8xbf16>
    %17 = arith.truncf %14 : vector<8x8xf32> to vector<8x8xbf16>
    %cst_6 = arith.constant dense<0.000000e+00> : vector<8x8xf32>
    %18 = tpu.matmul %16, %17, %cst_6 {dimension_numbers = #tpu.dot_dimension_numbers<[1], [1], [0], [0], [0, 0, 1, 0], [], []>} : vector<8x8xbf16>, vector<8x8xbf16>, vector<8x8xf32> -> vector<8x8xf32>
    %c0_7 = arith.constant 0 : index
    %c0_8 = arith.constant 0 : index
    %c0_9 = arith.constant 0 : index
    %19 = vector.load %arg3[%c0_7, %c0_8, %c0_9] : memref<1x1x8xf32, #tpu.memory_space<vmem>>, vector<1x1x8xf32>
    %20 = vector.shape_cast %19 : vector<1x1x8xf32> to vector<1x8xf32>
    %21 = vector.broadcast %20 : vector<1x8xf32> to vector<8x8xf32>
    %22 = arith.addf %18, %21 : vector<8x8xf32>
    %cst_10 = arith.constant dense<0xFF800000> : vector<8xf32>
    %23 = vector.multi_reduction <maximumf>, %22, %cst_10 [1] : vector<8x8xf32> to vector<8xf32>
    %24 = vector.shape_cast %23 : vector<8xf32> to vector<8x1xf32>
    %25 = vector.broadcast %24 : vector<8x1xf32> to vector<8x8xf32>
    %26 = arith.subf %22, %25 : vector<8x8xf32>
    %27 = math.exp %26 : vector<8x8xf32>
    %cst_11 = arith.constant dense<0.000000e+00> : vector<8xf32>
    %28 = vector.multi_reduction <add>, %27, %cst_11 [1] : vector<8x8xf32> to vector<8xf32>
    %29 = vector.shape_cast %28 : vector<8xf32> to vector<8x1xf32>
    %30 = tpu.reciprocal %29 : vector<8x1xf32> -> vector<8x1xf32>
    %31 = vector.broadcast %30 : vector<8x1xf32> to vector<8x8xf32>
    %32 = arith.mulf %27, %31 : vector<8x8xf32>
    %33 = arith.truncf %32 : vector<8x8xf32> to vector<8x8xbf16>
    %34 = arith.truncf %15 : vector<8x8xf32> to vector<8x8xbf16>
    %cst_12 = arith.constant dense<0.000000e+00> : vector<8x8xf32>
    %35 = tpu.matmul %33, %34, %cst_12 {dimension_numbers = #tpu.dot_dimension_numbers<[1], [0], [0], [1], [0, 0, 1, 1], [], []>} : vector<8x8xbf16>, vector<8x8xbf16>, vector<8x8xf32> -> vector<8x8xf32>
    %c0_13 = arith.constant 0 : index
    %c0_14 = arith.constant 0 : index
    %36 = vector.load %arg15[%c0_13, %c0_14] : memref<8x32xf32, #tpu.memory_space<vmem>>, vector<8x32xf32>
    %37 = arith.truncf %35 : vector<8x8xf32> to vector<8x8xbf16>
    %38 = arith.index_cast %arg1 : i32 to index
    %c0_15 = arith.constant 0 : index
    %c0_16 = arith.constant 0 : index
    %39 = vector.load %arg6[%38, %c0_15, %c0_16] : memref<4x8x32xbf16, #tpu.memory_space<vmem>>, vector<1x8x32xbf16>
    %40 = vector.shape_cast %39 : vector<1x8x32xbf16> to vector<8x32xbf16>
    %cst_17 = arith.constant dense<0.000000e+00> : vector<8x32xf32>
    %41 = tpu.matmul %37, %40, %cst_17 {dimension_numbers = #tpu.dot_dimension_numbers<[1], [0], [0], [1], [0, 0, 1, 1], [], []>} : vector<8x8xbf16>, vector<8x32xbf16>, vector<8x32xf32> -> vector<8x32xf32>
    %42 = arith.addf %36, %41 : vector<8x32xf32>
    %c0_18 = arith.constant 0 : index
    %c0_19 = arith.constant 0 : index
    %43 = vector.load %arg15[%c0_18, %c0_19] : memref<8x32xf32, #tpu.memory_space<vmem>>, vector<8x32xf32>
    tpu.vector_store %arg15[%c0_18, %c0_19], %42 {strides = array<i32>} : memref<8x32xf32, #tpu.memory_space<vmem>>, vector<8x32xf32>,
    %c3_i32 = arith.constant 3 : i32
    %44 = arith.cmpi eq, %arg1, %c3_i32 : i32
    %45 = arith.extui %44 : i1 to i32
    %c0_i32_20 = arith.constant 0 : i32
    %46 = arith.cmpi ne, %45, %c0_i32_20 : i32
    scf.if %46 {
      %c0_21 = arith.constant 0 : index
      %c0_22 = arith.constant 0 : index
      %c0_23 = arith.constant 0 : index
      %47 = vector.load %arg2[%c0_21, %c0_22, %c0_23] : memref<1x8x32xf32, #tpu.memory_space<vmem>>, vector<1x8x32xf32>
      %48 = vector.shape_cast %47 : vector<1x8x32xf32> to vector<8x32xf32>
      %c0_24 = arith.constant 0 : index
      %49 = memref.load %arg12[%c0_24] : memref<4xf32, #tpu.memory_space<smem>>
      %c1 = arith.constant 1 : index
      %50 = memref.load %arg12[%c1] : memref<4xf32, #tpu.memory_space<smem>>
      %c2 = arith.constant 2 : index
      %51 = memref.load %arg12[%c2] : memref<4xf32, #tpu.memory_space<smem>>
      %c3 = arith.constant 3 : index
      %52 = memref.load %arg12[%c3] : memref<4xf32, #tpu.memory_space<smem>>
      %c0_25 = arith.constant 0 : index
      %c0_26 = arith.constant 0 : index
      %53 = vector.load %arg15[%c0_25, %c0_26] : memref<8x32xf32, #tpu.memory_space<vmem>>, vector<8x32xf32>
      %c0_27 = arith.constant 0 : index
      %c0_28 = arith.constant 0 : index
      %54 = vector.load %arg7[%c0_27, %c0_28] : memref<1x32xf32, #tpu.memory_space<vmem>>, vector<1x32xf32>
      %55 = vector.broadcast %54 : vector<1x32xf32> to vector<8x32xf32>
      %56 = arith.addf %53, %55 : vector<8x32xf32>
      %57 = arith.addf %48, %56 : vector<8x32xf32>
      %cst_29 = arith.constant dense<0.000000e+00> : vector<8xf32>
      %58 = vector.multi_reduction <add>, %57, %cst_29 [1] : vector<8x32xf32> to vector<8xf32>
      %59 = vector.shape_cast %58 : vector<8xf32> to vector<8x1xf32>
      %cst_30 = arith.constant 3.200000e+01 : f32
      %60 = vector.broadcast %cst_30 : f32 to vector<8x1xf32>
      %61 = arith.divf %59, %60 : vector<8x1xf32>
      %62 = vector.broadcast %61 : vector<8x1xf32> to vector<8x32xf32>
      %63 = arith.subf %57, %62 : vector<8x32xf32>
      %64 = arith.mulf %63, %63 : vector<8x32xf32>
      %cst_31 = arith.constant dense<0.000000e+00> : vector<8xf32>
      %65 = vector.multi_reduction <add>, %64, %cst_31 [1] : vector<8x32xf32> to vector<8xf32>
      %66 = vector.shape_cast %65 : vector<8xf32> to vector<8x1xf32>
      %cst_32 = arith.constant 0.0322580636 : f32
      %67 = vector.broadcast %cst_32 : f32 to vector<8x1xf32>
      %68 = arith.mulf %66, %67 : vector<8x1xf32>
      %69 = math.sqrt %68 : vector<8x1xf32>
      %cst_33 = arith.constant 9.99999997E-7 : f32
      %70 = vector.broadcast %cst_33 : f32 to vector<8x1xf32>
      %71 = arith.addf %69, %70 : vector<8x1xf32>
      %72 = vector.broadcast %71 : vector<8x1xf32> to vector<8x32xf32>
      %73 = arith.divf %63, %72 : vector<8x32xf32>
      %74 = vector.broadcast %49 : f32 to vector<8x32xf32>
      %75 = arith.mulf %74, %73 : vector<8x32xf32>
      %76 = vector.broadcast %50 : f32 to vector<8x32xf32>
      %77 = arith.addf %75, %76 : vector<8x32xf32>
      %78 = arith.truncf %77 : vector<8x32xf32> to vector<8x32xbf16>
      %c0_34 = arith.constant 0 : index
      %c0_35 = arith.constant 0 : index
      %79 = vector.load %arg8[%c0_34, %c0_35] : memref<32x32xbf16, #tpu.memory_space<vmem>>, vector<32x32xbf16>
      %cst_36 = arith.constant dense<0.000000e+00> : vector<8x32xf32>
      %80 = tpu.matmul %78, %79, %cst_36 {dimension_numbers = #tpu.dot_dimension_numbers<[1], [0], [0], [1], [0, 0, 1, 1], [], []>} : vector<8x32xbf16>, vector<32x32xbf16>, vector<8x32xf32> -> vector<8x32xf32>
      %c0_37 = arith.constant 0 : index
      %c0_38 = arith.constant 0 : index
      %81 = vector.load %arg9[%c0_37, %c0_38] : memref<1x32xf32, #tpu.memory_space<vmem>>, vector<1x32xf32>
      %82 = vector.broadcast %81 : vector<1x32xf32> to vector<8x32xf32>
      %83 = arith.addf %80, %82 : vector<8x32xf32>
      %cst_39 = arith.constant 0.000000e+00 : f32
      %84 = vector.broadcast %cst_39 : f32 to vector<8x32xf32>
      %85 = arith.maximumf %83, %84 : vector<8x32xf32>
      %86 = arith.truncf %85 : vector<8x32xf32> to vector<8x32xbf16>
      %c0_40 = arith.constant 0 : index
      %c0_41 = arith.constant 0 : index
      %87 = vector.load %arg10[%c0_40, %c0_41] : memref<32x32xbf16, #tpu.memory_space<vmem>>, vector<32x32xbf16>
      %cst_42 = arith.constant dense<0.000000e+00> : vector<8x32xf32>
      %88 = tpu.matmul %86, %87, %cst_42 {dimension_numbers = #tpu.dot_dimension_numbers<[1], [0], [0], [1], [0, 0, 1, 1], [], []>} : vector<8x32xbf16>, vector<32x32xbf16>, vector<8x32xf32> -> vector<8x32xf32>
      %c0_43 = arith.constant 0 : index
      %c0_44 = arith.constant 0 : index
      %89 = vector.load %arg11[%c0_43, %c0_44] : memref<1x32xf32, #tpu.memory_space<vmem>>, vector<1x32xf32>
      %90 = vector.broadcast %89 : vector<1x32xf32> to vector<8x32xf32>
      %91 = arith.addf %88, %90 : vector<8x32xf32>
      %92 = arith.addf %77, %91 : vector<8x32xf32>
      %cst_45 = arith.constant dense<0.000000e+00> : vector<8xf32>
      %93 = vector.multi_reduction <add>, %92, %cst_45 [1] : vector<8x32xf32> to vector<8xf32>
      %94 = vector.shape_cast %93 : vector<8xf32> to vector<8x1xf32>
      %cst_46 = arith.constant 3.200000e+01 : f32
      %95 = vector.broadcast %cst_46 : f32 to vector<8x1xf32>
      %96 = arith.divf %94, %95 : vector<8x1xf32>
      %97 = vector.broadcast %96 : vector<8x1xf32> to vector<8x32xf32>
      %98 = arith.subf %92, %97 : vector<8x32xf32>
      %99 = arith.mulf %98, %98 : vector<8x32xf32>
      %cst_47 = arith.constant dense<0.000000e+00> : vector<8xf32>
      %100 = vector.multi_reduction <add>, %99, %cst_47 [1] : vector<8x32xf32> to vector<8xf32>
      %101 = vector.shape_cast %100 : vector<8xf32> to vector<8x1xf32>
      %cst_48 = arith.constant 0.0322580636 : f32
      %102 = vector.broadcast %cst_48 : f32 to vector<8x1xf32>
      %103 = arith.mulf %101, %102 : vector<8x1xf32>
      %104 = math.sqrt %103 : vector<8x1xf32>
      %cst_49 = arith.constant 9.99999997E-7 : f32
      %105 = vector.broadcast %cst_49 : f32 to vector<8x1xf32>
      %106 = arith.addf %104, %105 : vector<8x1xf32>
      %107 = vector.broadcast %106 : vector<8x1xf32> to vector<8x32xf32>
      %108 = arith.divf %98, %107 : vector<8x32xf32>
      %109 = vector.broadcast %51 : f32 to vector<8x32xf32>
      %110 = arith.mulf %109, %108 : vector<8x32xf32>
      %111 = vector.broadcast %52 : f32 to vector<8x32xf32>
      %112 = arith.addf %110, %111 : vector<8x32xf32>
      %c0_50 = arith.constant 0 : index
      %c0_51 = arith.constant 0 : index
      %c0_52 = arith.constant 0 : index
      %113 = vector.load %arg13[%c0_50, %c0_51, %c0_52] : memref<1x8x32xf32, #tpu.memory_space<vmem>>, vector<1x8x32xf32>
      %114 = vector.shape_cast %113 : vector<1x8x32xf32> to vector<8x32xf32>
      %115 = vector.shape_cast %112 : vector<8x32xf32> to vector<1x8x32xf32>
      tpu.vector_store %arg13[%c0_50, %c0_51, %c0_52], %115 {strides = array<i32>} : memref<1x8x32xf32, #tpu.memory_space<vmem>>, vector<1x8x32xf32>,
    } else {
    }
    return
  }
  func.func @transform_0(%arg0: i32, %arg1: i32) -> (i32, i32, i32) {
    %c0_i32 = arith.constant 0 : i32
    %c0_i32_0 = arith.constant 0 : i32
    %c0_i32_1 = arith.constant 0 : i32
    return %arg0, %c0_i32, %c0_i32_0 : i32, i32, i32
  }
  func.func @transform_1(%arg0: i32, %arg1: i32) -> (i32, i32, i32) {
    %c0_i32 = arith.constant 0 : i32
    %c0_i32_0 = arith.constant 0 : i32
    %c0_i32_1 = arith.constant 0 : i32
    return %arg0, %c0_i32, %c0_i32_0 : i32, i32, i32
  }
  func.func @transform_2(%arg0: i32, %arg1: i32) -> (i32, i32, i32) {
    %c0_i32 = arith.constant 0 : i32
    %c0_i32_0 = arith.constant 0 : i32
    %c0_i32_1 = arith.constant 0 : i32
    %c0_i32_2 = arith.constant 0 : i32
    return %c0_i32, %c0_i32_0, %c0_i32_1 : i32, i32, i32
  }
  func.func @transform_3(%arg0: i32, %arg1: i32) -> (i32, i32, i32) {
    %c0_i32 = arith.constant 0 : i32
    %c0_i32_0 = arith.constant 0 : i32
    %c0_i32_1 = arith.constant 0 : i32
    %c0_i32_2 = arith.constant 0 : i32
    return %c0_i32, %c0_i32_0, %c0_i32_1 : i32, i32, i32
  }
  func.func @transform_4(%arg0: i32, %arg1: i32) -> (i32, i32, i32) {
    %c0_i32 = arith.constant 0 : i32
    %c0_i32_0 = arith.constant 0 : i32
    %c0_i32_1 = arith.constant 0 : i32
    %c0_i32_2 = arith.constant 0 : i32
    return %c0_i32, %c0_i32_0, %c0_i32_1 : i32, i32, i32
  }
  func.func @transform_5(%arg0: i32, %arg1: i32) -> (i32, i32) {
    %c0_i32 = arith.constant 0 : i32
    %c0_i32_0 = arith.constant 0 : i32
    %c0_i32_1 = arith.constant 0 : i32
    return %c0_i32, %c0_i32_0 : i32, i32
  }
  func.func @transform_6(%arg0: i32, %arg1: i32) -> (i32, i32) {
    %c0_i32 = arith.constant 0 : i32
    %c0_i32_0 = arith.constant 0 : i32
    %c0_i32_1 = arith.constant 0 : i32
    return %c0_i32, %c0_i32_0 : i32, i32
  }
  func.func @transform_7(%arg0: i32, %arg1: i32) -> (i32, i32) {
    %c0_i32 = arith.constant 0 : i32
    %c0_i32_0 = arith.constant 0 : i32
    %c0_i32_1 = arith.constant 0 : i32
    return %c0_i32, %c0_i32_0 : i32, i32
  }
  func.func @transform_8(%arg0: i32, %arg1: i32) -> (i32, i32) {
    %c0_i32 = arith.constant 0 : i32
    %c0_i32_0 = arith.constant 0 : i32
    %c0_i32_1 = arith.constant 0 : i32
    return %c0_i32, %c0_i32_0 : i32, i32
  }
  func.func @transform_9(%arg0: i32, %arg1: i32) -> (i32, i32) {
    %c0_i32 = arith.constant 0 : i32
    %c0_i32_0 = arith.constant 0 : i32
    %c0_i32_1 = arith.constant 0 : i32
    return %c0_i32, %c0_i32_0 : i32, i32
  }
  func.func @transform_10(%arg0: i32, %arg1: i32) -> i32 {
    %c0_i32 = arith.constant 0 : i32
    %c0_i32_0 = arith.constant 0 : i32
    return %c0_i32 : i32
  }
  func.func @transform_11(%arg0: i32, %arg1: i32) -> (i32, i32, i32) {
    %c0_i32 = arith.constant 0 : i32
    %c0_i32_0 = arith.constant 0 : i32
    %c0_i32_1 = arith.constant 0 : i32
    return %arg0, %c0_i32, %c0_i32_0 : i32, i32, i32
  }
}

module attributes {stable_mosaic.version = 11 : i64} {
  func.func @_encoder_block_kernel(%arg0: i32, %arg1: i32, %arg2: memref<1x8x32xf32, #tpu.memory_space<vmem>>, %arg3: memref<1x1x8xf32, #tpu.memory_space<vmem>>, %arg4: memref<4x32x24xbf16, #tpu.memory_space<vmem>>, %arg5: memref<4x1x24xf32, #tpu.memory_space<vmem>>, %arg6: memref<4x8x32xbf16, #tpu.memory_space<vmem>>, %arg7: memref<1x32xf32, #tpu.memory_space<vmem>>, %arg8: memref<32x32xbf16, #tpu.memory_space<vmem>>, %arg9: memref<1x32xf32, #tpu.memory_space<vmem>>, %arg10: memref<32x32xbf16, #tpu.memory_space<vmem>>, %arg11: memref<1x32xf32, #tpu.memory_space<vmem>>, %arg12: memref<4xf32, #tpu.memory_space<smem>>, %arg13: memref<1x8x32xf32, #tpu.memory_space<vmem>>, %arg14: memref<8x32xbf16, #tpu.memory_space<vmem>>, %arg15: memref<8x32xf32, #tpu.memory_space<vmem>>) attributes {dimension_semantics = [#tpu.dimension_semantics<parallel>, #tpu.dimension_semantics<arbitrary>], iteration_bounds = array<i64: 2, 4>, scalar_prefetch = 0 : i64, scratch_operands = 2 : i64, tpu.core_type = #tpu.core_type<tc>, window_params = [{transform_indices = @transform_0, window_bounds = array<i64: 1, 8, 32>}, {transform_indices = @transform_1, window_bounds = array<i64: 1, 1, 8>}, {pipeline_mode = #tpu.pipeline_mode<synchronous>, transform_indices = @transform_2, window_bounds = array<i64: 4, 32, 24>}, {pipeline_mode = #tpu.pipeline_mode<synchronous>, transform_indices = @transform_3, window_bounds = array<i64: 4, 1, 24>}, {pipeline_mode = #tpu.pipeline_mode<synchronous>, transform_indices = @transform_4, window_bounds = array<i64: 4, 8, 32>}, {pipeline_mode = #tpu.pipeline_mode<synchronous>, transform_indices = @transform_5, window_bounds = array<i64: 1, 32>}, {pipeline_mode = #tpu.pipeline_mode<synchronous>, transform_indices = @transform_6, window_bounds = array<i64: 32, 32>}, {pipeline_mode = #tpu.pipeline_mode<synchronous>, transform_indices = @transform_7, window_bounds = array<i64: 1, 32>}, {pipeline_mode = #tpu.pipeline_mode<synchronous>, transform_indices = @transform_8, window_bounds = array<i64: 32, 32>}, {pipeline_mode = #tpu.pipeline_mode<synchronous>, transform_indices = @transform_9, window_bounds = array<i64: 1, 32>}, {transform_indices = @transform_10, window_bounds = array<i64: 4>}, {transform_indices = @transform_11, window_bounds = array<i64: 1, 8, 32>}]} {
    %c0_i32 = arith.constant 0 : i32
    %0 = arith.cmpi eq, %arg1, %c0_i32 : i32
    %1 = arith.extui %0 : i1 to i32
    %c0_i32_0 = arith.constant 0 : i32
    %2 = arith.cmpi ne, %1, %c0_i32_0 : i32
    scf.if %2 {
      %c0_21 = arith.constant 0 : index
      %c0_22 = arith.constant 0 : index
      %c0_23 = arith.constant 0 : index
      %47 = vector.load %arg2[%c0_21, %c0_22, %c0_23] : memref<1x8x32xf32, #tpu.memory_space<vmem>>, vector<1x8x32xf32>
      %48 = vector.shape_cast %47 : vector<1x8x32xf32> to vector<8x32xf32>
      %49 = arith.truncf %48 : vector<8x32xf32> to vector<8x32xbf16>
      %c0_24 = arith.constant 0 : index
      %c0_25 = arith.constant 0 : index
      %50 = vector.load %arg14[%c0_24, %c0_25] : memref<8x32xbf16, #tpu.memory_space<vmem>>, vector<8x32xbf16>
      tpu.vector_store %arg14[%c0_24, %c0_25], %49 {strides = array<i32>} : memref<8x32xbf16, #tpu.memory_space<vmem>>, vector<8x32xbf16>,
      %cst_26 = arith.constant 0.000000e+00 : f32
      %51 = vector.broadcast %cst_26 : f32 to vector<8x32xf32>
      %c0_27 = arith.constant 0 : index
      %c0_28 = arith.constant 0 : index
      %52 = vector.load %arg15[%c0_27, %c0_28] : memref<8x32xf32, #tpu.memory_space<vmem>>, vector<8x32xf32>
      tpu.vector_store %arg15[%c0_27, %c0_28], %51 {strides = array<i32>} : memref<8x32xf32, #tpu.memory_space<vmem>>, vector<8x32xf32>,
    } else {
    }
    %c0 = arith.constant 0 : index
    %c0_1 = arith.constant 0 : index
    %3 = vector.load %arg14[%c0, %c0_1] : memref<8x32xbf16, #tpu.memory_space<vmem>>, vector<8x32xbf16>
    %4 = arith.index_cast %arg1 : i32 to index
    %c0_2 = arith.constant 0 : index
    %c0_3 = arith.constant 0 : index
    %5 = vector.load %arg4[%4, %c0_2, %c0_3] : memref<4x32x24xbf16, #tpu.memory_space<vmem>>, vector<1x32x24xbf16>
    %6 = vector.shape_cast %5 : vector<1x32x24xbf16> to vector<32x24xbf16>
    %cst = arith.constant dense<0.000000e+00> : vector<8x24xf32>
    %7 = tpu.matmul %3, %6, %cst {dimension_numbers = #tpu.dot_dimension_numbers<[1], [0], [0], [1], [0, 0, 1, 1], [], []>} : vector<8x32xbf16>, vector<32x24xbf16>, vector<8x24xf32> -> vector<8x24xf32>
    %8 = arith.index_cast %arg1 : i32 to index
    %c0_4 = arith.constant 0 : index
    %c0_5 = arith.constant 0 : index
    %9 = vector.load %arg5[%8, %c0_4, %c0_5] : memref<4x1x24xf32, #tpu.memory_space<vmem>>, vector<1x1x24xf32>
    %10 = vector.shape_cast %9 : vector<1x1x24xf32> to vector<1x24xf32>
    %11 = vector.broadcast %10 : vector<1x24xf32> to vector<8x24xf32>
    %12 = arith.addf %7, %11 : vector<8x24xf32>
    %13 = vector.extract_strided_slice %12 {offsets = [0, 0], sizes = [8, 8], strides = [1, 1]} : vector<8x24xf32> to vector<8x8xf32>
    %14 = vector.extract_strided_slice %12 {offsets = [0, 8], sizes = [8, 8], strides = [1, 1]} : vector<8x24xf32> to vector<8x8xf32>
    %15 = vector.extract_strided_slice %12 {offsets = [0, 16], sizes = [8, 8], strides = [1, 1]} : vector<8x24xf32> to vector<8x8xf32>
    %16 = arith.truncf %13 : vector<8x8xf32> to vector<8x8xbf16>
    %17 = arith.truncf %14 : vector<8x8xf32> to vector<8x8xbf16>
    %cst_6 = arith.constant dense<0.000000e+00> : vector<8x8xf32>
    %18 = tpu.matmul %16, %17, %cst_6 {dimension_numbers = #tpu.dot_dimension_numbers<[1], [1], [0], [0], [0, 0, 1, 0], [], []>} : vector<8x8xbf16>, vector<8x8xbf16>, vector<8x8xf32> -> vector<8x8xf32>
    %c0_7 = arith.constant 0 : index
    %c0_8 = arith.constant 0 : index
    %c0_9 = arith.constant 0 : index
    %19 = vector.load %arg3[%c0_7, %c0_8, %c0_9] : memref<1x1x8xf32, #tpu.memory_space<vmem>>, vector<1x1x8xf32>
    %20 = vector.shape_cast %19 : vector<1x1x8xf32> to vector<1x8xf32>
    %21 = vector.broadcast %20 : vector<1x8xf32> to vector<8x8xf32>
    %22 = arith.addf %18, %21 : vector<8x8xf32>
    %cst_10 = arith.constant dense<0xFF800000> : vector<8xf32>
    %23 = vector.multi_reduction <maximumf>, %22, %cst_10 [1] : vector<8x8xf32> to vector<8xf32>
    %24 = vector.shape_cast %23 : vector<8xf32> to vector<8x1xf32>
    %25 = vector.broadcast %24 : vector<8x1xf32> to vector<8x8xf32>
    %26 = arith.subf %22, %25 : vector<8x8xf32>
    %27 = math.exp %26 : vector<8x8xf32>
    %cst_11 = arith.constant dense<0.000000e+00> : vector<8xf32>
    %28 = vector.multi_reduction <add>, %27, %cst_11 [1] : vector<8x8xf32> to vector<8xf32>
    %29 = vector.shape_cast %28 : vector<8xf32> to vector<8x1xf32>
    %30 = tpu.reciprocal %29 : vector<8x1xf32> -> vector<8x1xf32>
    %31 = vector.broadcast %30 : vector<8x1xf32> to vector<8x8xf32>
    %32 = arith.mulf %27, %31 : vector<8x8xf32>
    %33 = arith.truncf %32 : vector<8x8xf32> to vector<8x8xbf16>
    %34 = arith.truncf %15 : vector<8x8xf32> to vector<8x8xbf16>
    %cst_12 = arith.constant dense<0.000000e+00> : vector<8x8xf32>
    %35 = tpu.matmul %33, %34, %cst_12 {dimension_numbers = #tpu.dot_dimension_numbers<[1], [0], [0], [1], [0, 0, 1, 1], [], []>} : vector<8x8xbf16>, vector<8x8xbf16>, vector<8x8xf32> -> vector<8x8xf32>
    %c0_13 = arith.constant 0 : index
    %c0_14 = arith.constant 0 : index
    %36 = vector.load %arg15[%c0_13, %c0_14] : memref<8x32xf32, #tpu.memory_space<vmem>>, vector<8x32xf32>
    %37 = arith.truncf %35 : vector<8x8xf32> to vector<8x8xbf16>
    %38 = arith.index_cast %arg1 : i32 to index
    %c0_15 = arith.constant 0 : index
    %c0_16 = arith.constant 0 : index
    %39 = vector.load %arg6[%38, %c0_15, %c0_16] : memref<4x8x32xbf16, #tpu.memory_space<vmem>>, vector<1x8x32xbf16>
    %40 = vector.shape_cast %39 : vector<1x8x32xbf16> to vector<8x32xbf16>
    %cst_17 = arith.constant dense<0.000000e+00> : vector<8x32xf32>
    %41 = tpu.matmul %37, %40, %cst_17 {dimension_numbers = #tpu.dot_dimension_numbers<[1], [0], [0], [1], [0, 0, 1, 1], [], []>} : vector<8x8xbf16>, vector<8x32xbf16>, vector<8x32xf32> -> vector<8x32xf32>
    %42 = arith.addf %36, %41 : vector<8x32xf32>
    %c0_18 = arith.constant 0 : index
    %c0_19 = arith.constant 0 : index
    %43 = vector.load %arg15[%c0_18, %c0_19] : memref<8x32xf32, #tpu.memory_space<vmem>>, vector<8x32xf32>
    tpu.vector_store %arg15[%c0_18, %c0_19], %42 {strides = array<i32>} : memref<8x32xf32, #tpu.memory_space<vmem>>, vector<8x32xf32>,
    %c3_i32 = arith.constant 3 : i32
    %44 = arith.cmpi eq, %arg1, %c3_i32 : i32
    %45 = arith.extui %44 : i1 to i32
    %c0_i32_20 = arith.constant 0 : i32
    %46 = arith.cmpi ne, %45, %c0_i32_20 : i32
    scf.if %46 {
      %c0_21 = arith.constant 0 : index
      %c0_22 = arith.constant 0 : index
      %c0_23 = arith.constant 0 : index
      %47 = vector.load %arg2[%c0_21, %c0_22, %c0_23] : memref<1x8x32xf32, #tpu.memory_space<vmem>>, vector<1x8x32xf32>
      %48 = vector.shape_cast %47 : vector<1x8x32xf32> to vector<8x32xf32>
      %c0_24 = arith.constant 0 : index
      %49 = memref.load %arg12[%c0_24] : memref<4xf32, #tpu.memory_space<smem>>
      %c1 = arith.constant 1 : index
      %50 = memref.load %arg12[%c1] : memref<4xf32, #tpu.memory_space<smem>>
      %c2 = arith.constant 2 : index
      %51 = memref.load %arg12[%c2] : memref<4xf32, #tpu.memory_space<smem>>
      %c3 = arith.constant 3 : index
      %52 = memref.load %arg12[%c3] : memref<4xf32, #tpu.memory_space<smem>>
      %c0_25 = arith.constant 0 : index
      %c0_26 = arith.constant 0 : index
      %53 = vector.load %arg15[%c0_25, %c0_26] : memref<8x32xf32, #tpu.memory_space<vmem>>, vector<8x32xf32>
      %c0_27 = arith.constant 0 : index
      %c0_28 = arith.constant 0 : index
      %54 = vector.load %arg7[%c0_27, %c0_28] : memref<1x32xf32, #tpu.memory_space<vmem>>, vector<1x32xf32>
      %55 = vector.broadcast %54 : vector<1x32xf32> to vector<8x32xf32>
      %56 = arith.addf %53, %55 : vector<8x32xf32>
      %57 = arith.addf %48, %56 : vector<8x32xf32>
      %cst_29 = arith.constant dense<0.000000e+00> : vector<8xf32>
      %58 = vector.multi_reduction <add>, %57, %cst_29 [1] : vector<8x32xf32> to vector<8xf32>
      %59 = vector.shape_cast %58 : vector<8xf32> to vector<8x1xf32>
      %cst_30 = arith.constant 3.200000e+01 : f32
      %60 = vector.broadcast %cst_30 : f32 to vector<8x1xf32>
      %61 = arith.divf %59, %60 : vector<8x1xf32>
      %62 = vector.broadcast %61 : vector<8x1xf32> to vector<8x32xf32>
      %63 = arith.subf %57, %62 : vector<8x32xf32>
      %64 = arith.mulf %63, %63 : vector<8x32xf32>
      %cst_31 = arith.constant dense<0.000000e+00> : vector<8xf32>
      %65 = vector.multi_reduction <add>, %64, %cst_31 [1] : vector<8x32xf32> to vector<8xf32>
      %66 = vector.shape_cast %65 : vector<8xf32> to vector<8x1xf32>
      %cst_32 = arith.constant 0.0322580636 : f32
      %67 = vector.broadcast %cst_32 : f32 to vector<8x1xf32>
      %68 = arith.mulf %66, %67 : vector<8x1xf32>
      %69 = math.sqrt %68 : vector<8x1xf32>
      %cst_33 = arith.constant 9.99999997E-7 : f32
      %70 = vector.broadcast %cst_33 : f32 to vector<8x1xf32>
      %71 = arith.addf %69, %70 : vector<8x1xf32>
      %72 = vector.broadcast %71 : vector<8x1xf32> to vector<8x32xf32>
      %73 = arith.divf %63, %72 : vector<8x32xf32>
      %74 = vector.broadcast %49 : f32 to vector<8x32xf32>
      %75 = arith.mulf %74, %73 : vector<8x32xf32>
      %76 = vector.broadcast %50 : f32 to vector<8x32xf32>
      %77 = arith.addf %75, %76 : vector<8x32xf32>
      %78 = arith.truncf %77 : vector<8x32xf32> to vector<8x32xbf16>
      %c0_34 = arith.constant 0 : index
      %c0_35 = arith.constant 0 : index
      %79 = vector.load %arg8[%c0_34, %c0_35] : memref<32x32xbf16, #tpu.memory_space<vmem>>, vector<32x32xbf16>
      %cst_36 = arith.constant dense<0.000000e+00> : vector<8x32xf32>
      %80 = tpu.matmul %78, %79, %cst_36 {dimension_numbers = #tpu.dot_dimension_numbers<[1], [0], [0], [1], [0, 0, 1, 1], [], []>} : vector<8x32xbf16>, vector<32x32xbf16>, vector<8x32xf32> -> vector<8x32xf32>
      %c0_37 = arith.constant 0 : index
      %c0_38 = arith.constant 0 : index
      %81 = vector.load %arg9[%c0_37, %c0_38] : memref<1x32xf32, #tpu.memory_space<vmem>>, vector<1x32xf32>
      %82 = vector.broadcast %81 : vector<1x32xf32> to vector<8x32xf32>
      %83 = arith.addf %80, %82 : vector<8x32xf32>
      %cst_39 = arith.constant 0.000000e+00 : f32
      %84 = vector.broadcast %cst_39 : f32 to vector<8x32xf32>
      %85 = arith.maximumf %83, %84 : vector<8x32xf32>
      %86 = arith.truncf %85 : vector<8x32xf32> to vector<8x32xbf16>
      %c0_40 = arith.constant 0 : index
      %c0_41 = arith.constant 0 : index
      %87 = vector.load %arg10[%c0_40, %c0_41] : memref<32x32xbf16, #tpu.memory_space<vmem>>, vector<32x32xbf16>
      %cst_42 = arith.constant dense<0.000000e+00> : vector<8x32xf32>
      %88 = tpu.matmul %86, %87, %cst_42 {dimension_numbers = #tpu.dot_dimension_numbers<[1], [0], [0], [1], [0, 0, 1, 1], [], []>} : vector<8x32xbf16>, vector<32x32xbf16>, vector<8x32xf32> -> vector<8x32xf32>
      %c0_43 = arith.constant 0 : index
      %c0_44 = arith.constant 0 : index
      %89 = vector.load %arg11[%c0_43, %c0_44] : memref<1x32xf32, #tpu.memory_space<vmem>>, vector<1x32xf32>
      %90 = vector.broadcast %89 : vector<1x32xf32> to vector<8x32xf32>
      %91 = arith.addf %88, %90 : vector<8x32xf32>
      %92 = arith.addf %77, %91 : vector<8x32xf32>
      %cst_45 = arith.constant dense<0.000000e+00> : vector<8xf32>
      %93 = vector.multi_reduction <add>, %92, %cst_45 [1] : vector<8x32xf32> to vector<8xf32>
      %94 = vector.shape_cast %93 : vector<8xf32> to vector<8x1xf32>
      %cst_46 = arith.constant 3.200000e+01 : f32
      %95 = vector.broadcast %cst_46 : f32 to vector<8x1xf32>
      %96 = arith.divf %94, %95 : vector<8x1xf32>
      %97 = vector.broadcast %96 : vector<8x1xf32> to vector<8x32xf32>
      %98 = arith.subf %92, %97 : vector<8x32xf32>
      %99 = arith.mulf %98, %98 : vector<8x32xf32>
      %cst_47 = arith.constant dense<0.000000e+00> : vector<8xf32>
      %100 = vector.multi_reduction <add>, %99, %cst_47 [1] : vector<8x32xf32> to vector<8xf32>
      %101 = vector.shape_cast %100 : vector<8xf32> to vector<8x1xf32>
      %cst_48 = arith.constant 0.0322580636 : f32
      %102 = vector.broadcast %cst_48 : f32 to vector<8x1xf32>
      %103 = arith.mulf %101, %102 : vector<8x1xf32>
      %104 = math.sqrt %103 : vector<8x1xf32>
      %cst_49 = arith.constant 9.99999997E-7 : f32
      %105 = vector.broadcast %cst_49 : f32 to vector<8x1xf32>
      %106 = arith.addf %104, %105 : vector<8x1xf32>
      %107 = vector.broadcast %106 : vector<8x1xf32> to vector<8x32xf32>
      %108 = arith.divf %98, %107 : vector<8x32xf32>
      %109 = vector.broadcast %51 : f32 to vector<8x32xf32>
      %110 = arith.mulf %109, %108 : vector<8x32xf32>
      %111 = vector.broadcast %52 : f32 to vector<8x32xf32>
      %112 = arith.addf %110, %111 : vector<8x32xf32>
      %c0_50 = arith.constant 0 : index
      %c0_51 = arith.constant 0 : index
      %c0_52 = arith.constant 0 : index
      %113 = vector.load %arg13[%c0_50, %c0_51, %c0_52] : memref<1x8x32xf32, #tpu.memory_space<vmem>>, vector<1x8x32xf32>
      %114 = vector.shape_cast %113 : vector<1x8x32xf32> to vector<8x32xf32>
      %115 = vector.shape_cast %112 : vector<8x32xf32> to vector<1x8x32xf32>
      tpu.vector_store %arg13[%c0_50, %c0_51, %c0_52], %115 {strides = array<i32>} : memref<1x8x32xf32, #tpu.memory_space<vmem>>, vector<1x8x32xf32>,
    } else {
    }
    return
  }
  func.func @transform_0(%arg0: i32, %arg1: i32) -> (i32, i32, i32) {
    %c0_i32 = arith.constant 0 : i32
    %c0_i32_0 = arith.constant 0 : i32
    %c0_i32_1 = arith.constant 0 : i32
    return %arg0, %c0_i32, %c0_i32_0 : i32, i32, i32
  }
  func.func @transform_1(%arg0: i32, %arg1: i32) -> (i32, i32, i32) {
    %c0_i32 = arith.constant 0 : i32
    %c0_i32_0 = arith.constant 0 : i32
    %c0_i32_1 = arith.constant 0 : i32
    return %arg0, %c0_i32, %c0_i32_0 : i32, i32, i32
  }
  func.func @transform_2(%arg0: i32, %arg1: i32) -> (i32, i32, i32) {
    %c0_i32 = arith.constant 0 : i32
    %c0_i32_0 = arith.constant 0 : i32
    %c0_i32_1 = arith.constant 0 : i32
    %c0_i32_2 = arith.constant 0 : i32
    return %c0_i32, %c0_i32_0, %c0_i32_1 : i32, i32, i32
  }
  func.func @transform_3(%arg0: i32, %arg1: i32) -> (i32, i32, i32) {
    %c0_i32 = arith.constant 0 : i32
    %c0_i32_0 = arith.constant 0 : i32
    %c0_i32_1 = arith.constant 0 : i32
    %c0_i32_2 = arith.constant 0 : i32
    return %c0_i32, %c0_i32_0, %c0_i32_1 : i32, i32, i32
  }
  func.func @transform_4(%arg0: i32, %arg1: i32) -> (i32, i32, i32) {
    %c0_i32 = arith.constant 0 : i32
    %c0_i32_0 = arith.constant 0 : i32
    %c0_i32_1 = arith.constant 0 : i32
    %c0_i32_2 = arith.constant 0 : i32
    return %c0_i32, %c0_i32_0, %c0_i32_1 : i32, i32, i32
  }
  func.func @transform_5(%arg0: i32, %arg1: i32) -> (i32, i32) {
    %c0_i32 = arith.constant 0 : i32
    %c0_i32_0 = arith.constant 0 : i32
    %c0_i32_1 = arith.constant 0 : i32
    return %c0_i32, %c0_i32_0 : i32, i32
  }
  func.func @transform_6(%arg0: i32, %arg1: i32) -> (i32, i32) {
    %c0_i32 = arith.constant 0 : i32
    %c0_i32_0 = arith.constant 0 : i32
    %c0_i32_1 = arith.constant 0 : i32
    return %c0_i32, %c0_i32_0 : i32, i32
  }
  func.func @transform_7(%arg0: i32, %arg1: i32) -> (i32, i32) {
    %c0_i32 = arith.constant 0 : i32
    %c0_i32_0 = arith.constant 0 : i32
    %c0_i32_1 = arith.constant 0 : i32
    return %c0_i32, %c0_i32_0 : i32, i32
  }
  func.func @transform_8(%arg0: i32, %arg1: i32) -> (i32, i32) {
    %c0_i32 = arith.constant 0 : i32
    %c0_i32_0 = arith.constant 0 : i32
    %c0_i32_1 = arith.constant 0 : i32
    return %c0_i32, %c0_i32_0 : i32, i32
  }
  func.func @transform_9(%arg0: i32, %arg1: i32) -> (i32, i32) {
    %c0_i32 = arith.constant 0 : i32
    %c0_i32_0 = arith.constant 0 : i32
    %c0_i32_1 = arith.constant 0 : i32
    return %c0_i32, %c0_i32_0 : i32, i32
  }
  func.func @transform_10(%arg0: i32, %arg1: i32) -> i32 {
    %c0_i32 = arith.constant 0 : i32
    %c0_i32_0 = arith.constant 0 : i32
    return %c0_i32 : i32
  }
  func.func @transform_11(%arg0: i32, %arg1: i32) -> (i32, i32, i32) {
    %c0_i32 = arith.constant 0 : i32
    %c0_i32_0 = arith.constant 0 : i32
    %c0_i32_1 = arith.constant 0 : i32
    return %arg0, %c0_i32, %c0_i32_0 : i32, i32, i32
  }
}

</mosaic_0001>

<bundles_post_ra>
// kernel: tpu_custom_call.1
= control target key start
LH: loop header
LB: loop body
LE: loop exit
PB: predicated region body
PF: predicated region fallthrough
CT: control target
= control target key end

     0   :  { %s1598_s0 = inlined_call_operand.vmem [shape: f32[2,8,32], index: 0, kind: input, shape index: {}]   ;;  %s1599_s1 = inlined_call_operand.vmem [shape: f32[2,1,8], index: 1, kind: input, shape index: {}]   ;;  %s1600_s2 = inlined_call_operand.vmem [shape: bf16[4,32,24], index: 2, kind: input, shape index: {}]   ;;  %s1601_s3 = inlined_call_operand.vmem [shape: f32[4,1,24], index: 3, kind: input, shape index: {}]   ;;  %s1602_s4 = inlined_call_operand.vmem [shape: bf16[4,8,32], index: 4, kind: input, shape index: {}]   ;;  %s1603_s5 = inlined_call_operand.vmem [shape: f32[1,32], index: 5, kind: input, shape index: {}]   ;;  %s1604_s6 = inlined_call_operand.vmem [shape: bf16[32,32], index: 6, kind: input, shape index: {}]   ;;  %s1605_s7 = inlined_call_operand.vmem [shape: f32[1,32], index: 7, kind: input, shape index: {}]   ;;  %s1606_s8 = inlined_call_operand.vmem [shape: bf16[32,32], index: 8, kind: input, shape index: {}]   ;;  %s1607_s9 = inlined_call_operand.vmem [shape: f32[1,32], index: 9, kind: input, shape index: {}]   ;;  %s1608_s10 = inlined_call_operand.vmem [shape: f32[4], index: 10, kind: input, shape index: {}]   ;;  %s1609_s11 = inlined_call_operand.hbm [shape: f32[2,8,32], index: 11, kind: output, shape index: {}]  }
   0x1   :  { %1613 = sst [smem:[#allocation14_spill]] %s1598_s0 }
   0x2   :  { %1614 = sst [smem:[#allocation15_spill]] %s1608_s10 }
   0x3   :  { %16 = vsyncpa [#allocation6], 0 }
   0x4   :  { %17 = vsyncpa [#allocation5], 0 }
   0x5   :  { %19 = vsyncpa [#allocation5 + $0x1], 0  ;;  %s1377_s17 = smov 0   ;;  %s1379_s18 = smov 0  }
   0x6   :  { %s1381_s19 = smov 0   ;;  %s1383_s20 = smov 0  }
   0x7   :  { %s1385_s21 = smov 0   ;;  %s1387_s22 = smov 0  }
   0x8   :  { %s1389_s23 = smov 0   ;;  %s1391_s24 = smov 0  }
   0x9 LB: > { %1615 = sst [smem:[#allocation10_spill]] %s1298_s22  ;;  %s992_s25 = sadd.s32 4294967295, %s1306_s24   ;;  %s1306_s24 = sphi %s1391_s24, %s25_s24   ;;  %s1302_s23 = sphi %s1389_s23, %s1635_s23   ;;  %s1298_s22 = sphi %s1387_s22, %s1634_s22   ;;  %s1294_s21 = sphi %s1385_s21, %s1633_s21   ;;  %s1290_s20 = sphi %s1383_s20, %s1627_s20   ;;  %s1286_s19 = sphi %s1381_s19, %s1632_s19   ;;  %s1282_s18 = sphi %s1379_s18, %s1631_s18   ;;  %s1278_s17 = sphi %s1377_s17, %s1630_s17  }
   0xa   : > { %s993_s26 = sadd.s32 4294967294, %s1306_s24   ;;  %s34_s27 = sadd.s32 1, %s1298_s22 }
   0xb   : > { %s37_s28 = sadd.s32 1, %s1302_s23  ;;  %p35_p0 = scmp.ge.s32.totalorder %s34_s27, 4 }
   0xc   : > { %s285_s29 = sadd.s32 1, %s1286_s19  ;;  %p295_p1 = scmp.ne.s32.totalorder %s1286_s19, %s1282_s18 }
   0xd   : > { %p296_p2 = scmp.eq.s32.totalorder %s992_s25, 7  ;;  %s1637_s27 = smov (%p35_p0, %s34_s27), 0 }
   0xe   : > { %1616 = sst [smem:[#allocation11_spill]] %s1637_s27  ;;  %s1639_s28 = smov (!%p35_p0, %s37_s28), %s1302_s23 }
   0xf   : > { %p1427_p3 = por %p296_p2, %p295_p1  ;;  %p301_p4 = scmp.ne.s32.totalorder %s1282_s18, %s1278_s17 }
  0x10   : > { %p39_p5 = scmp.ge.s32.totalorder %s1639_s28, 2  ;;  %p302_p6 = scmp.eq.s32.totalorder %s993_s26, 7 }
  0x11   : > { %p994_p7 = scmp.ge.s32.totalorder %s1306_s24, 1  ;;  %p309_p8 = scmp.lt.s32.totalorder %s1306_s24, 9 }
  0x12   : > { %s1641_s28 = smov (%p39_p5, %s1639_s28), 0  ;;  %p1437_p9 = por %p302_p6, %p301_p4 }
  0x13   : > { %1618 = sst [smem:[#allocation12_spill]] %s1641_s28  ;;  %p1441_p10 = pnand %p994_p7, %p309_p8 }
  0x14   : > { %s1619_s12 = scalar_select %p1437_p9, 1, 0 }
  0x15   : > { %s282_s14 = ssub.s32 %s1302_s23, %s1641_s28  ;;  %p1094_p12 = pneg %p1441_p10 }
  0x16   : > { %1620 = sst [smem:[#allocation13_spill]] %s1619_s12  ;;  %p283_p11 = scmp.eq.s32.totalorder %s282_s14, 0 }
  0x17   : > { %p1449_p13 = scmp.eq.s32.totalorder %s992_s25, 0  ;;  %s1623_s10 = sld [smem:[#allocation15_spill]] }
  0x18   : > { %s1457_s22 = scalar_select %p283_p11, %s1286_s19, %s285_s29  }
  0x19   : > { %p1095_p0 = pnand %p1449_p13, %p1094_p12 }
  0x1b   : > { %p1197_p2 = pneg %p1095_p0 }
  0x1d   : > { %s346_s27 = sshll.u32 %s1623_s10, 4  ;;  %s347_s27 = int_to_ptr.vmem [resolvable:$true] %s346_s27 }
  0x1e   : > { %s1195_s12 = scalar_lea.vmem %s347_s27, 16  ;;  %p1203_p6 = scmp.lt.s32.totalorder %s347_s27, %s347_s27 }
  0x1f   : > { %p1196_p1 = scmp.ne.s32.totalorder %s347_s27, %s1195_s12  ;;  %p1204_p7 = scmp.lt.s32.totalorder %s1195_s12, %s1195_s12 }
  0x21   : > { %p1198_p4 = pnand %p1197_p2, %p1196_p1  ;;  %p1205_p8 = por %p1204_p7, %p1203_p6 }
  0x23   : > { %p1199_p5 = pneg %p1198_p4 }
  0x25   : > { %p1206_p9 = pnand %p1205_p8, %p1199_p5 }
  0x27   : > { %1209 = shalt.err (!%p1206_p9)
}
  0x28   : > { %s1308_s25 = smov [#allocation4]   ;;  %372 = sbr.rel (%p1441_p10) target bundleno = 2377 (0x949), region = 64 }
  0x29   : > { %1097 = dma.vmem_to_smem (!%p1095_p0), %s347_s27, 16, %s1308_s25, [#allocation6]  }
  0x2d   : > { %1269 = dma.done.wait (%p1449_p13), [#allocation6], 16  }
  0x2e   : > { %1271 = vsyncadd (%p1449_p13), [#allocation6], 4294967280 }
  0x2f   : > { %378 = sfence }
  0x30   : > { %s412_s29 = sand.u32 1, %s1282_s18   ;;  %p415_p11 = scmp.lt.s32.totalorder %s1294_s21, 1 }
  0x31   : > { %s1471_s12 = sshll.u32 %s412_s29, 3  ;;  %s1624_s0 = sld [smem:[#allocation14_spill]] }
  0x32   : > { %s1474_s27 = scalar_select %p415_p11, %s1294_s21, 1 }
  0x33   : > { %s414_s28 = scalar_lea.vmem [#allocation7], %s1471_s12  ;;  %p1001_p9 = scmp.ne.s32.totalorder %s1290_s20, 0 }
  0x34   : > { %s1000_s13 = sshll.u32 %s1474_s27, 3  ;;  %s421_s15 = scalar_lea.vmem %s1599_s1, %s1474_s27 }
  0x35   : > { %426 = sbr.rel (%p1001_p9) target bundleno = 62 (0x3e), region = 72 }
  0x37   : > { %s1484_s10 = scalar_lea.vmem %s1624_s0, %s1000_s13 }
  0x3a   : > { %v427_v0 = vld [vmem:[%s1484_s10] sm:$0xff]  ;;  %vm429_vm0 = vcmask 257024   ;;  %vm431_vm1 = vcmask 261120   ;;  %v1309_v2 = vmov 0.0  }
  0x3b   : > { %v428_v1 = vpack.c.bf16 %v427_v0, %v427_v0  ;;  %432 = vst.msk [vmem:[#allocation3] sm:$0xff] %vm431_vm1, %v1309_v2 }
  0x3d   : > { %430 = vst.msk [vmem:[#allocation2] sm:$0xf] %vm429_vm0, %v428_v1 }
  0x3e PF: > { %s1030_s14 = sshll.u32 %s1290_s20, 4  ;;  %v1310_v3 = vmov 0.0   ;;  %vm1311_vm2 = vmmov 0   ;;  %vm461_vm3 = vcmask 261120   ;;  %s441_s16 = scalar_lea.vmem %s1601_s3, %s1290_s20  ;;  %vm516_vm4 = vcmask 64512  }
  0x3f   : > { %1046 = vmatprep.subr.bf16.mxu0 %v1310_v3  ;;  %s436_s26 = scalar_lea.vmem %s1600_s2, %s1030_s14  ;;  %1050 = vmatprep.mubr.msk.bf16.mxu0 %vm1311_vm2, %v1310_v3  ;;  %v1004_v7 = vld [vmem:[%s441_s16] ss:$0 sm:$0xff]  ;;  %s1312_s13 = smov 120   ;;  %vm580_vm5 = vcmask 1043456  }
  0x40   : > { %v1177_v4 = vld [vmem:[%s436_s26 + $0x8] sm:$0xff]   ;;  %1054 = vmatprep.subr.bf16.mxu1 %v1310_v3  ;;  %1056 = vmatprep.mubr.msk.bf16.mxu1 %vm1311_vm2, %v1310_v3  ;;  %v1178_v5 = vld [vmem:[%s436_s26] sm:$0xff]   ;;  %s1011_s14 = sshll.u32 %s1290_s20, 2  ;;  %p1013_p10 = scmp.ne.s32.totalorder %s1290_s20, 3 }
  0x41   : > { %1047 = vmatpush3.bf16.msra.mxu0 %v1177_v4  ;;  %v1008_v16 = vld [vmem:[%s421_s15] ss:$0 sm:$0xff]  ;;  %s627_s15 = scalar_lea.vmem %s1602_s4, %s1011_s14  ;;  %s682_s16 = sld [smem:[#allocation4]] (!%p1013_p10) }
  0x42   : > { %1048 = vmatprep.subr.bf16.mxu0 %v1310_v3  ;;  %v628_v28 = vld [vmem:[%s627_s15] sm:$0xf]  ;;  %v624_v41 = vld [vmem:[#allocation3] sm:$0xff]  ;;  %s1014_s15 = sld [smem:[#allocation4 + $0x1]] (!%p1013_p10) }
  0x43   : > { %v633_v29 = vsel %vm580_vm5, %v628_v28, 0 }
  0x44   : > { %v433_v6 = vld [vmem:[#allocation2] sm:$0xf] }
  0x45   : > { %1049 = vmatpush3.bf16.msra.mxu0 %v1178_v5 }
  0x46   : > { %1060 = vmatprep.subr.bf16.mxu0 %v1310_v3 }
  0x48   : > { %1051 = vmatmul.mubr.msk.bf16.vlgmr.msra.gmra.mxu0 %vm461_vm3, %v433_v6 }
  0x49   : > { %1062 = vmatprep.mubr.msk.bf16.mxu0 %vm1311_vm2, %v1310_v3 }
 0x108   : > { %v499_v8 = vpop.f32.mrf.mxu0 }
 0x109   : > { %v500_v9 = vadd.f32 %v1004_v7, %v499_v8 }
 0x10a   : > { %v1052_v10 = vpop.f32.mrf.mxu0 }
 0x10b   : > { %v505_v11 = vpack.c.bf16 %v500_v9, %v500_v9 }
 0x10c   : > { %v502_v12 = vpop.f32.mrf.mxu0 }
 0x10d   : > { %514 = vrot.lane.b32.xlu0 %v505_v11, %s1312_s13  ;;  %s1313_s13 = smov 112  }
 0x10e   : > { %v1053_v13 = vpop.f32.mrf.mxu0 }
 0x17f   : > { %v515_v14 = vpop.permute.xlu0 %514 }
 0x180   : > { %v521_v15 = vsel %vm516_vm4, %v515_v14, 0 }
 0x181   : > { %1055 = vmatpush3.bf16.xpose.msra.mxu1 %v521_v15 }
 0x182   : > { %1066 = vmatprep.subr.bf16.mxu1 %v1310_v3 }
 0x188   : > { %1057 = vmatmul.mubr.msk.bf16.vlgmr.msra.gmra.mxu1 %vm516_vm4, %v505_v11 }
 0x189   : > { %1068 = vmatprep.mubr.msk.bf16.mxu1 %vm1311_vm2, %v1310_v3  ;;  %1067 = vmatpush3.bf16.msra.mxu1 %v633_v29 }
 0x248   : > { %v557_v17 = vpop.f32.mrf.mxu1 }
 0x249   : > { %v558_v18 = vadd.f32 %v1008_v16, %v557_v17 }
 0x24a   : > { %v1058_v19 = vpop.f32.mrf.mxu1 }
 0x24b   : > { %v563_v20 = vsel %vm516_vm4, %v558_v18, -inf }
 0x24c   : > { %564 = vmax.xlane.f32.xlu0 %v563_v20  ;;  %v560_v21 = vpop.f32.mrf.mxu1 }
 0x24e   : > { %v1059_v22 = vpop.f32.mrf.mxu1 }
 0x2d5   : > { %v565_v23 = vpop.xlane.xlu0 %564 }
 0x2d6   : > { %v566_v24 = vsub.f32 %v558_v18, %v565_v23 }
 0x2d8   : > { %v567_v25 = vmul.f32 1.442695, %v566_v24 }
 0x2da   : > { %1179 = vpow2.f32 %v567_v25 }
 0x2e7   : > { %v1180_v26 = vpop.eup %1179 }
 0x2e8   : > { %v569_v27 = vsel %vm516_vm4, %v1180_v26, 0.0 }
 0x2e9   : > { %570 = vadd.xlane.f32.xlu1 %v569_v27 }
 0x2fa   : > { %575 = vrot.lane.b32.xlu1 %v505_v11, %s1313_s13  ;;  %s1016_s13 = sld [smem:[#allocation4 + $0x3]] (!%p1013_p10) }
 0x372   : > { %v571_v30 = vpop.xlane.xlu1 %570 }
 0x373   : > { %1181 = vrcp.f32 %v571_v30 }
 0x376   : > { %v576_v31 = vpop.permute.xlu1 %575 }
 0x377   : > { %v582_v32 = vsel %vm580_vm5, %v576_v31, 0 }
 0x378   : > { %1061 = vmatpush3.bf16.msra.mxu0 %v582_v32 }
 0x380   : > { %v1182_v33 = vpop.eup %1181 }
 0x381   : > { %v573_v34 = vmul.f32 %v1182_v33, %v1180_v26 }
 0x383   : > { %v574_v35 = vpack.c.bf16 %v573_v34, %v573_v34 }
 0x385   : > { %1063 = vmatmul.mubr.msk.bf16.vlgmr.msra.gmra.mxu0 %vm516_vm4, %v574_v35 }
 0x445   : > { %v618_v36 = vpop.f32.mrf.mxu0 }
 0x446   : > { %v625_v37 = vpack.c.bf16 %v618_v36, %v618_v36 }
 0x447   : > { %v1064_v38 = vpop.f32.mrf.mxu0 }
 0x448   : > { %1069 = vmatmul.mubr.msk.bf16.vlgmr.msra.gmra.mxu1 %vm516_vm4, %v625_v37 }
 0x449   : > { %v621_v39 = vpop.f32.mrf.mxu0 }
 0x44b   : > { %v1065_v40 = vpop.f32.mrf.mxu0 }
 0x508   : > { %v669_v42 = vpop.f32.mrf.mxu1 }
 0x509   : > { %v675_v43 = vadd.f32 %v669_v42, %v624_v41 }
 0x50a   : > { %v1070_v44 = vpop.f32.mrf.mxu1  ;;  %680 = sbr.rel (%p1013_p10) target bundleno = 2354 (0x932), region = 76 }
 0x50b   : > { %676 = vst.msk [vmem:[#allocation3] sm:$0xff] %vm461_vm3, %v675_v43 }
 0x50c   : > { %v672_v45 = vpop.f32.mrf.mxu1 }
 0x50e   : > { %v1071_v46 = vpop.f32.mrf.mxu1 }
 0x50f   : > { %v681_v47 = vld [vmem:[%s1484_s10] sm:$0xff]  ;;  %v1183_v58 = vld [vmem:[%s1604_s6 + $0x8] sm:$0xff]   ;;  %v1314_v59 = vmov 0.0   ;;  %vm1315_vm6 = vmmov 0   ;;  %v717_v6 = vstv %s682_s16  ;;  %v719_v8 = vstv %s1014_s15  ;;  %s1015_s15 = sld [smem:[#allocation4 + $0x2]] }
 0x510   : > { %v1017_v49 = vld [vmem:[%s1603_s5] ss:$0 sm:$0xff]  ;;  %1072 = vmatprep.subr.bf16.mxu0 %v1314_v59  ;;  %1076 = vmatprep.mubr.msk.bf16.mxu0 %vm1315_vm6, %v1314_v59  ;;  %v1185_v12 = vld [vmem:[%s1606_s8 + $0x8] sm:$0xff]   ;;  %v879_v46 = vstv %s1016_s13 }
 0x511   : > { %1073 = vmatpush3.bf16.msra.mxu0 %v1183_v58  ;;  %v1184_v60 = vld [vmem:[%s1604_s6] sm:$0xff]   ;;  %1080 = vmatprep.subr.bf16.mxu1 %v1314_v59 }
 0x512   : > { %v686_v48 = vld [vmem:[#allocation3] sm:$0xff]  ;;  %1074 = vmatprep.subr.bf16.mxu0 %v1314_v59  ;;  %1084 = vmatprep.mubr.msk.bf16.mxu1 %vm1315_vm6, %v1314_v59  ;;  %v1018_v14 = vld [vmem:[%s1605_s7] ss:$0 sm:$0xff] }
 0x513   : > { %v694_v50 = vadd.f32 %v1017_v49, %v686_v48  ;;  %1081 = vmatpush3.bf16.msra.mxu1 %v1185_v12  ;;  %v1186_v13 = vld [vmem:[%s1606_s8] sm:$0xff]  }
 0x514   : > { %1082 = vmatprep.subr.bf16.mxu1 %v1314_v59  ;;  %v1022_v22 = vld [vmem:[%s1607_s9] ss:$0 sm:$0xff] }
 0x515   : > { %v695_v51 = vadd.f32 %v694_v50, %v681_v47  ;;  %1075 = vmatpush3.bf16.msra.mxu0 %v1184_v60  ;;  %v877_v44 = vstv %s1015_s15 }
 0x517   : > { %v696_v52 = vsel %vm461_vm3, %v695_v51, 0.0  ;;  %1083 = vmatpush3.bf16.msra.mxu1 %v1186_v13 }
 0x518   : > { %697 = vadd.xlane.f32.xlu0 %v696_v52 }
 0x5a1   : > { %v698_v53 = vpop.xlane.xlu0 %697 }
 0x5a2   : > { %v700_v54 = vmul.f32 0.03125, %v698_v53 }
 0x5a4   : > { %v701_v55 = vsub.f32 %v695_v51, %v700_v54 }
 0x5a6   : > { %v702_v56 = vmul.f32 %v701_v55, %v701_v55 }
 0x5a8   : > { %v703_v57 = vsel %vm461_vm3, %v702_v56, 0.0 }
 0x5a9   : > { %704 = vadd.xlane.f32.xlu0 %v703_v57 }
 0x632   : > { %v705_v61 = vpop.xlane.xlu0 %704 }
 0x633   : > { %v706_v62 = vmul.f32 0.032258064, %v705_v61 }
 0x635   : > { %1187 = vrsqrt.f32 %v706_v62  ;;  %vm709_vm7 = vcmp.eq.f32.partialorder %v706_v62, inf  ;;  %v712_v1 = vand.u32 2147483648, %v706_v62  ;;  %vm711_vm8 = vcmp.eq.f32.partialorder %v706_v62, 0.0 }
 0x642   : > { %v1188_v63 = vpop.eup %1187 }
 0x643   : > { %v708_v0 = vmul.f32 %v1188_v63, %v706_v62 }
 0x645   : > { %v710_v2 = vsel %vm709_vm7, %v706_v62, %v708_v0 }
 0x646   : > { %v713_v3 = vsel %vm711_vm8, %v712_v1, %v710_v2 }
 0x647   : > { %v714_v4 = vadd.f32 1e-06, %v713_v3 }
 0x649   : > { %1189 = vrcp.f32 %v714_v4 }
 0x656   : > { %v1190_v5 = vpop.eup %1189 }
 0x657   : > { %v716_v7 = vmul.f32 %v1190_v5, %v701_v55 }
 0x659   : > { %v718_v9 = vmul.f32 %v717_v6, %v716_v7 }
 0x65b   : > { %v720_v10 = vadd.f32 %v719_v8, %v718_v9 }
 0x65d   : > { %v721_v11 = vpack.c.bf16 %v720_v10, %v720_v10 }
 0x65f   : > { %1077 = vmatmul.mubr.msk.bf16.vlgmr.msra.gmra.mxu0 %vm461_vm3, %v721_v11 }
 0x71f   : > { %v782_v15 = vpop.f32.mrf.mxu0 }
 0x720   : > { %v783_v16 = vadd.f32 %v1018_v14, %v782_v15 }
 0x721   : > { %v1078_v17 = vpop.f32.mrf.mxu0 }
 0x722   : > { %v788_v18 = vmax.f32 %v783_v16, 0.0 }
 0x723   : > { %v785_v19 = vpop.f32.mrf.mxu0 }
 0x724   : > { %v789_v20 = vpack.c.bf16 %v788_v18, %v788_v18 }
 0x725   : > { %v1079_v21 = vpop.f32.mrf.mxu0 }
 0x726   : > { %1085 = vmatmul.mubr.msk.bf16.vlgmr.msra.gmra.mxu1 %vm461_vm3, %v789_v20 }
 0x7e6   : > { %v850_v23 = vpop.f32.mrf.mxu1 }
 0x7e7   : > { %v851_v24 = vadd.f32 %v1022_v22, %v850_v23 }
 0x7e8   : > { %v1086_v25 = vpop.f32.mrf.mxu1 }
 0x7e9   : > { %v856_v26 = vadd.f32 %v851_v24, %v720_v10 }
 0x7ea   : > { %v853_v27 = vpop.f32.mrf.mxu1 }
 0x7eb   : > { %v857_v28 = vsel %vm461_vm3, %v856_v26, 0.0 }
 0x7ec   : > { %858 = vadd.xlane.f32.xlu1 %v857_v28  ;;  %v1087_v29 = vpop.f32.mrf.mxu1 }
 0x875   : > { %v859_v30 = vpop.xlane.xlu1 %858 }
 0x876   : > { %v860_v31 = vmul.f32 0.03125, %v859_v30 }
 0x878   : > { %v861_v32 = vsub.f32 %v856_v26, %v860_v31 }
 0x87a   : > { %v862_v33 = vmul.f32 %v861_v32, %v861_v32 }
 0x87c   : > { %v863_v34 = vsel %vm461_vm3, %v862_v33, 0.0 }
 0x87d   : > { %864 = vadd.xlane.f32.xlu1 %v863_v34 }
 0x906   : > { %v865_v35 = vpop.xlane.xlu1 %864 }
 0x907   : > { %v866_v36 = vmul.f32 0.032258064, %v865_v35 }
 0x909   : > { %1191 = vrsqrt.f32 %v866_v36  ;;  %vm869_vm9 = vcmp.eq.f32.partialorder %v866_v36, inf  ;;  %v872_v39 = vand.u32 2147483648, %v866_v36  ;;  %vm871_vm10 = vcmp.eq.f32.partialorder %v866_v36, 0.0 }
 0x916   : > { %v1192_v37 = vpop.eup %1191 }
 0x917   : > { %v868_v38 = vmul.f32 %v1192_v37, %v866_v36 }
 0x919   : > { %v870_v40 = vsel %vm869_vm9, %v866_v36, %v868_v38 }
 0x91a   : > { %v873_v41 = vsel %vm871_vm10, %v872_v39, %v870_v40 }
 0x91b   : > { %v874_v42 = vadd.f32 1e-06, %v873_v41 }
 0x91d   : > { %1193 = vrcp.f32 %v874_v42 }
 0x92a   : > { %v1194_v43 = vpop.eup %1193 }
 0x92b   : > { %v876_v45 = vmul.f32 %v1194_v43, %v861_v32 }
 0x92d   : > { %v878_v47 = vmul.f32 %v877_v44, %v876_v45 }
 0x92f   : > { %v880_v48 = vadd.f32 %v879_v46, %v878_v47 }
 0x931   : > { %881 = vst.msk [vmem:[%s414_s28] sm:$0xff] %vm461_vm3, %v880_v48 }
 0x932 PF: > { %s1027_s26 = sshll.u32 %s1294_s21, 7  ;;  %s896_s10 = sshll.u32 %s414_s28, 4  ;;  %s897_s10 = int_to_ptr.vmem [resolvable:$true] %s896_s10 }
 0x933   : > { %s894_s14 = scalar_lea.hbm %s1609_s11, %s1027_s26  ;;  %s883_s27 = scalar_lea.sflag [#allocation5], %s412_s29 }
 0x934   : > { %s1210_s16 = scalar_lea.vmem %s897_s10, 128  ;;  %s1316_s15 = smov [#allocation7]  }
 0x935   : > { %p1211_p12 = scmp.ne.s32.totalorder %s897_s10, %s1210_s16  ;;  %s1214_s13 = sshll.u32 %s1316_s15, 4  ;;  %s1215_s13 = int_to_ptr.vmem [resolvable:$false] %s1214_s13 }
 0x936   : > { %s1216_s0 = scalar_lea.vmem %s1215_s13, 256  ;;  %p1217_p1 = scmp.lt.s32.totalorder %s897_s10, %s1215_s13 }
 0x937   : > { %p1212_p13 = pnand %p1211_p12, %p1427_p3  ;;  %p1218_p2 = scmp.lt.s32.totalorder %s1216_s0, %s1210_s16 }
 0x939   : > { %p1213_p0 = pneg %p1212_p13  ;;  %p1219_p4 = por %p1218_p2, %p1217_p1 }
 0x93b   : > { %p1220_p5 = pnand %p1219_p4, %p1213_p0 }
 0x93d   : > { %1223 = shalt.err (!%p1220_p5)
}
 0x93e   : > { %s1224_s21 = scalar_lea.hbm %s894_s14, 128  ;;  %s1228_s12 = scalar_lea.hbm %s1609_s11, 256 }
 0x93f   : > { %p1225_p6 = scmp.ne.s32.totalorder %s894_s14, %s1224_s21  ;;  %p1229_p11 = scmp.lt.s32.totalorder %s894_s14, %s1609_s11 }
 0x940   : > { %p1230_p9 = scmp.lt.s32.totalorder %s1228_s12, %s1224_s21 }
 0x941   : > { %p1226_p7 = pnand %p1225_p6, %p1427_p3 }
 0x942   : > { %p1231_p10 = por %p1230_p9, %p1229_p11 }
 0x943   : > { %p1227_p8 = pneg %p1226_p7 }
 0x945   : > { %p1232_p12 = pnand %p1231_p10, %p1227_p8 }
 0x947   : > { %1235 = shalt.err (!%p1232_p12)
}
 0x948   : > { %1092 = dma.vmem_to_hbm [thread:$0]  (%p1427_p3), %s897_s10, 128, %s894_s14, %s883_s27  }
 0x949 PF: > { %s1625_s0 = sld [smem:[#allocation13_spill]]  ;;  %p1104_p13 = scmp.ge.s32.totalorder %s1306_s24, 2 }
 0x94a   : > { %s908_s20 = sand.u32 1, %s1278_s17  }
 0x94b   : > { %s909_s16 = scalar_lea.sflag [#allocation5], %s908_s20 }
 0x94f   : > { %p1626_p0 = scmp.ne.s32.totalorder %s1625_s0, 0 }
 0x951   : > { %p1099_p1 = pnand %p1104_p13, %p1626_p0 }
 0x953   : > { %p1100_p2 = pneg %p1099_p1 }
 0x955   : > { %1273 = dma.done.wait (%p1100_p2), %s909_s16, 128  }
 0x956   : > { %1275 = vsyncadd (%p1100_p2), %s909_s16, 4294967168  ;;  %s25_s24 = sadd.s32 1, %s1306_s24   ;;  %s1627_s20 = sld [smem:[#allocation10_spill]] }
 0x957   : > { %p22_p4 = scmp.ge.s32.totalorder %s25_s24, 10   ;;  %s1628_s30 = sld [smem:[#allocation11_spill]] }
 0x958   : > { %s1629_s14 = sld [smem:[#allocation12_spill]]  ;;  %s1630_s17 = smov %s1282_s18 }
 0x959   : > { %s1631_s18 = smov %s1286_s19  ;;  %s1632_s19 = smov %s1457_s22 }
 0x95a   : > { %s1633_s21 = smov %s1302_s23  ;;  %24 = sbr.rel (!%p22_p4) target bundleno = 9 (0x9), region = 118 }
 0x95d   : > { %s1634_s22 = smov %s1628_s30 }
 0x95e   : > { %s1635_s23 = smov %s1629_s14 }
 0x95f   :  { %914 = vsyncpa [#allocation5], 1 }
 0x960   :  { %916 = vsyncpa [#allocation5 + $0x1], 1 }
 0x961   :  { %917 = vsyncpa [#allocation6], 1 }
 0x962   :  { %919 = vsyncpa [#allocation6 + $0x1], 1 }

// kernel: tpu_custom_call.1
= control target key start
LH: loop header
LB: loop body
LE: loop exit
PB: predicated region body
PF: predicated region fallthrough
CT: control target
= control target key end

     0   :  { %s1598_s0 = inlined_call_operand.vmem [shape: f32[2,8,32], index: 0, kind: input, shape index: {}]   ;;  %s1599_s1 = inlined_call_operand.vmem [shape: f32[2,1,8], index: 1, kind: input, shape index: {}]   ;;  %s1600_s2 = inlined_call_operand.vmem [shape: bf16[4,32,24], index: 2, kind: input, shape index: {}]   ;;  %s1601_s3 = inlined_call_operand.vmem [shape: f32[4,1,24], index: 3, kind: input, shape index: {}]   ;;  %s1602_s4 = inlined_call_operand.vmem [shape: bf16[4,8,32], index: 4, kind: input, shape index: {}]   ;;  %s1603_s5 = inlined_call_operand.vmem [shape: f32[1,32], index: 5, kind: input, shape index: {}]   ;;  %s1604_s6 = inlined_call_operand.vmem [shape: bf16[32,32], index: 6, kind: input, shape index: {}]   ;;  %s1605_s7 = inlined_call_operand.vmem [shape: f32[1,32], index: 7, kind: input, shape index: {}]   ;;  %s1606_s8 = inlined_call_operand.vmem [shape: bf16[32,32], index: 8, kind: input, shape index: {}]   ;;  %s1607_s9 = inlined_call_operand.vmem [shape: f32[1,32], index: 9, kind: input, shape index: {}]   ;;  %s1608_s10 = inlined_call_operand.vmem [shape: f32[4], index: 10, kind: input, shape index: {}]   ;;  %s1609_s11 = inlined_call_operand.hbm [shape: f32[2,8,32], index: 11, kind: output, shape index: {}]  }
   0x1   :  { %1613 = sst [smem:[#allocation14_spill]] %s1598_s0 }
   0x2   :  { %1614 = sst [smem:[#allocation15_spill]] %s1608_s10 }
   0x3   :  { %16 = vsyncpa [#allocation6], 0 }
   0x4   :  { %17 = vsyncpa [#allocation5], 0 }
   0x5   :  { %19 = vsyncpa [#allocation5 + $0x1], 0  ;;  %s1377_s17 = smov 0   ;;  %s1379_s18 = smov 0  }
   0x6   :  { %s1381_s19 = smov 0   ;;  %s1383_s20 = smov 0  }
   0x7   :  { %s1385_s21 = smov 0   ;;  %s1387_s22 = smov 0  }
   0x8   :  { %s1389_s23 = smov 0   ;;  %s1391_s24 = smov 0  }
   0x9 LB: > { %1615 = sst [smem:[#allocation10_spill]] %s1298_s22  ;;  %s992_s25 = sadd.s32 4294967295, %s1306_s24   ;;  %s1306_s24 = sphi %s1391_s24, %s25_s24   ;;  %s1302_s23 = sphi %s1389_s23, %s1635_s23   ;;  %s1298_s22 = sphi %s1387_s22, %s1634_s22   ;;  %s1294_s21 = sphi %s1385_s21, %s1633_s21   ;;  %s1290_s20 = sphi %s1383_s20, %s1627_s20   ;;  %s1286_s19 = sphi %s1381_s19, %s1632_s19   ;;  %s1282_s18 = sphi %s1379_s18, %s1631_s18   ;;  %s1278_s17 = sphi %s1377_s17, %s1630_s17  }
   0xa   : > { %s993_s26 = sadd.s32 4294967294, %s1306_s24   ;;  %s34_s27 = sadd.s32 1, %s1298_s22 }
   0xb   : > { %s37_s28 = sadd.s32 1, %s1302_s23  ;;  %p35_p0 = scmp.ge.s32.totalorder %s34_s27, 4 }
   0xc   : > { %s285_s29 = sadd.s32 1, %s1286_s19  ;;  %p295_p1 = scmp.ne.s32.totalorder %s1286_s19, %s1282_s18 }
   0xd   : > { %p296_p2 = scmp.eq.s32.totalorder %s992_s25, 7  ;;  %s1637_s27 = smov (%p35_p0, %s34_s27), 0 }
   0xe   : > { %1616 = sst [smem:[#allocation11_spill]] %s1637_s27  ;;  %s1639_s28 = smov (!%p35_p0, %s37_s28), %s1302_s23 }
   0xf   : > { %p1427_p3 = por %p296_p2, %p295_p1  ;;  %p301_p4 = scmp.ne.s32.totalorder %s1282_s18, %s1278_s17 }
  0x10   : > { %p39_p5 = scmp.ge.s32.totalorder %s1639_s28, 2  ;;  %p302_p6 = scmp.eq.s32.totalorder %s993_s26, 7 }
  0x11   : > { %p994_p7 = scmp.ge.s32.totalorder %s1306_s24, 1  ;;  %p309_p8 = scmp.lt.s32.totalorder %s1306_s24, 9 }
  0x12   : > { %s1641_s28 = smov (%p39_p5, %s1639_s28), 0  ;;  %p1437_p9 = por %p302_p6, %p301_p4 }
  0x13   : > { %1618 = sst [smem:[#allocation12_spill]] %s1641_s28  ;;  %p1441_p10 = pnand %p994_p7, %p309_p8 }
  0x14   : > { %s1619_s12 = scalar_select %p1437_p9, 1, 0 }
  0x15   : > { %s282_s14 = ssub.s32 %s1302_s23, %s1641_s28  ;;  %p1094_p12 = pneg %p1441_p10 }
  0x16   : > { %1620 = sst [smem:[#allocation13_spill]] %s1619_s12  ;;  %p283_p11 = scmp.eq.s32.totalorder %s282_s14, 0 }
  0x17   : > { %p1449_p13 = scmp.eq.s32.totalorder %s992_s25, 0  ;;  %s1623_s10 = sld [smem:[#allocation15_spill]] }
  0x18   : > { %s1457_s22 = scalar_select %p283_p11, %s1286_s19, %s285_s29  }
  0x19   : > { %p1095_p0 = pnand %p1449_p13, %p1094_p12 }
  0x1b   : > { %p1197_p2 = pneg %p1095_p0 }
  0x1d   : > { %s346_s27 = sshll.u32 %s1623_s10, 4  ;;  %s347_s27 = int_to_ptr.vmem [resolvable:$true] %s346_s27 }
  0x1e   : > { %s1195_s12 = scalar_lea.vmem %s347_s27, 16  ;;  %p1203_p6 = scmp.lt.s32.totalorder %s347_s27, %s347_s27 }
  0x1f   : > { %p1196_p1 = scmp.ne.s32.totalorder %s347_s27, %s1195_s12  ;;  %p1204_p7 = scmp.lt.s32.totalorder %s1195_s12, %s1195_s12 }
  0x21   : > { %p1198_p4 = pnand %p1197_p2, %p1196_p1  ;;  %p1205_p8 = por %p1204_p7, %p1203_p6 }
  0x23   : > { %p1199_p5 = pneg %p1198_p4 }
  0x25   : > { %p1206_p9 = pnand %p1205_p8, %p1199_p5 }
  0x27   : > { %1209 = shalt.err (!%p1206_p9)
}
  0x28   : > { %s1308_s25 = smov [#allocation4]   ;;  %372 = sbr.rel (%p1441_p10) target bundleno = 2377 (0x949), region = 64 }
  0x29   : > { %1097 = dma.vmem_to_smem (!%p1095_p0), %s347_s27, 16, %s1308_s25, [#allocation6]  }
  0x2d   : > { %1269 = dma.done.wait (%p1449_p13), [#allocation6], 16  }
  0x2e   : > { %1271 = vsyncadd (%p1449_p13), [#allocation6], 4294967280 }
  0x2f   : > { %378 = sfence }
  0x30   : > { %s412_s29 = sand.u32 1, %s1282_s18   ;;  %p415_p11 = scmp.lt.s32.totalorder %s1294_s21, 1 }
  0x31   : > { %s1471_s12 = sshll.u32 %s412_s29, 3  ;;  %s1624_s0 = sld [smem:[#allocation14_spill]] }
  0x32   : > { %s1474_s27 = scalar_select %p415_p11, %s1294_s21, 1 }
  0x33   : > { %s414_s28 = scalar_lea.vmem [#allocation7], %s1471_s12  ;;  %p1001_p9 = scmp.ne.s32.totalorder %s1290_s20, 0 }
  0x34   : > { %s1000_s13 = sshll.u32 %s1474_s27, 3  ;;  %s421_s15 = scalar_lea.vmem %s1599_s1, %s1474_s27 }
  0x35   : > { %426 = sbr.rel (%p1001_p9) target bundleno = 62 (0x3e), region = 72 }
  0x37   : > { %s1484_s10 = scalar_lea.vmem %s1624_s0, %s1000_s13 }
  0x3a   : > { %v427_v0 = vld [vmem:[%s1484_s10] sm:$0xff]  ;;  %vm429_vm0 = vcmask 257024   ;;  %vm431_vm1 = vcmask 261120   ;;  %v1309_v2 = vmov 0.0  }
  0x3b   : > { %v428_v1 = vpack.c.bf16 %v427_v0, %v427_v0  ;;  %432 = vst.msk [vmem:[#allocation3] sm:$0xff] %vm431_vm1, %v1309_v2 }
  0x3d   : > { %430 = vst.msk [vmem:[#allocation2] sm:$0xf] %vm429_vm0, %v428_v1 }
  0x3e PF: > { %s1030_s14 = sshll.u32 %s1290_s20, 4  ;;  %v1310_v3 = vmov 0.0   ;;  %vm1311_vm2 = vmmov 0   ;;  %vm461_vm3 = vcmask 261120   ;;  %s441_s16 = scalar_lea.vmem %s1601_s3, %s1290_s20  ;;  %vm516_vm4 = vcmask 64512  }
  0x3f   : > { %1046 = vmatprep.subr.bf16.mxu0 %v1310_v3  ;;  %s436_s26 = scalar_lea.vmem %s1600_s2, %s1030_s14  ;;  %1050 = vmatprep.mubr.msk.bf16.mxu0 %vm1311_vm2, %v1310_v3  ;;  %v1004_v7 = vld [vmem:[%s441_s16] ss:$0 sm:$0xff]  ;;  %s1312_s13 = smov 120   ;;  %vm580_vm5 = vcmask 1043456  }
  0x40   : > { %v1177_v4 = vld [vmem:[%s436_s26 + $0x8] sm:$0xff]   ;;  %1054 = vmatprep.subr.bf16.mxu1 %v1310_v3  ;;  %1056 = vmatprep.mubr.msk.bf16.mxu1 %vm1311_vm2, %v1310_v3  ;;  %v1178_v5 = vld [vmem:[%s436_s26] sm:$0xff]   ;;  %s1011_s14 = sshll.u32 %s1290_s20, 2  ;;  %p1013_p10 = scmp.ne.s32.totalorder %s1290_s20, 3 }
  0x41   : > { %1047 = vmatpush3.bf16.msra.mxu0 %v1177_v4  ;;  %v1008_v16 = vld [vmem:[%s421_s15] ss:$0 sm:$0xff]  ;;  %s627_s15 = scalar_lea.vmem %s1602_s4, %s1011_s14  ;;  %s682_s16 = sld [smem:[#allocation4]] (!%p1013_p10) }
  0x42   : > { %1048 = vmatprep.subr.bf16.mxu0 %v1310_v3  ;;  %v628_v28 = vld [vmem:[%s627_s15] sm:$0xf]  ;;  %v624_v41 = vld [vmem:[#allocation3] sm:$0xff]  ;;  %s1014_s15 = sld [smem:[#allocation4 + $0x1]] (!%p1013_p10) }
  0x43   : > { %v633_v29 = vsel %vm580_vm5, %v628_v28, 0 }
  0x44   : > { %v433_v6 = vld [vmem:[#allocation2] sm:$0xf] }
  0x45   : > { %1049 = vmatpush3.bf16.msra.mxu0 %v1178_v5 }
  0x46   : > { %1060 = vmatprep.subr.bf16.mxu0 %v1310_v3 }
  0x48   : > { %1051 = vmatmul.mubr.msk.bf16.vlgmr.msra.gmra.mxu0 %vm461_vm3, %v433_v6 }
  0x49   : > { %1062 = vmatprep.mubr.msk.bf16.mxu0 %vm1311_vm2, %v1310_v3 }
 0x108   : > { %v499_v8 = vpop.f32.mrf.mxu0 }
 0x109   : > { %v500_v9 = vadd.f32 %v1004_v7, %v499_v8 }
 0x10a   : > { %v1052_v10 = vpop.f32.mrf.mxu0 }
 0x10b   : > { %v505_v11 = vpack.c.bf16 %v500_v9, %v500_v9 }
 0x10c   : > { %v502_v12 = vpop.f32.mrf.mxu0 }
 0x10d   : > { %514 = vrot.lane.b32.xlu0 %v505_v11, %s1312_s13  ;;  %s1313_s13 = smov 112  }
 0x10e   : > { %v1053_v13 = vpop.f32.mrf.mxu0 }
 0x17f   : > { %v515_v14 = vpop.permute.xlu0 %514 }
 0x180   : > { %v521_v15 = vsel %vm516_vm4, %v515_v14, 0 }
 0x181   : > { %1055 = vmatpush3.bf16.xpose.msra.mxu1 %v521_v15 }
 0x182   : > { %1066 = vmatprep.subr.bf16.mxu1 %v1310_v3 }
 0x188   : > { %1057 = vmatmul.mubr.msk.bf16.vlgmr.msra.gmra.mxu1 %vm516_vm4, %v505_v11 }
 0x189   : > { %1068 = vmatprep.mubr.msk.bf16.mxu1 %vm1311_vm2, %v1310_v3  ;;  %1067 = vmatpush3.bf16.msra.mxu1 %v633_v29 }
 0x248   : > { %v557_v17 = vpop.f32.mrf.mxu1 }
 0x249   : > { %v558_v18 = vadd.f32 %v1008_v16, %v557_v17 }
 0x24a   : > { %v1058_v19 = vpop.f32.mrf.mxu1 }
 0x24b   : > { %v563_v20 = vsel %vm516_vm4, %v558_v18, -inf }
 0x24c   : > { %564 = vmax.xlane.f32.xlu0 %v563_v20  ;;  %v560_v21 = vpop.f32.mrf.mxu1 }
 0x24e   : > { %v1059_v22 = vpop.f32.mrf.mxu1 }
 0x2d5   : > { %v565_v23 = vpop.xlane.xlu0 %564 }
 0x2d6   : > { %v566_v24 = vsub.f32 %v558_v18, %v565_v23 }
 0x2d8   : > { %v567_v25 = vmul.f32 1.442695, %v566_v24 }
 0x2da   : > { %1179 = vpow2.f32 %v567_v25 }
 0x2e7   : > { %v1180_v26 = vpop.eup %1179 }
 0x2e8   : > { %v569_v27 = vsel %vm516_vm4, %v1180_v26, 0.0 }
 0x2e9   : > { %570 = vadd.xlane.f32.xlu1 %v569_v27 }
 0x2fa   : > { %575 = vrot.lane.b32.xlu1 %v505_v11, %s1313_s13  ;;  %s1016_s13 = sld [smem:[#allocation4 + $0x3]] (!%p1013_p10) }
 0x372   : > { %v571_v30 = vpop.xlane.xlu1 %570 }
 0x373   : > { %1181 = vrcp.f32 %v571_v30 }
 0x376   : > { %v576_v31 = vpop.permute.xlu1 %575 }
 0x377   : > { %v582_v32 = vsel %vm580_vm5, %v576_v31, 0 }
 0x378   : > { %1061 = vmatpush3.bf16.msra.mxu0 %v582_v32 }
 0x380   : > { %v1182_v33 = vpop.eup %1181 }
 0x381   : > { %v573_v34 = vmul.f32 %v1182_v33, %v1180_v26 }
 0x383   : > { %v574_v35 = vpack.c.bf16 %v573_v34, %v573_v34 }
 0x385   : > { %1063 = vmatmul.mubr.msk.bf16.vlgmr.msra.gmra.mxu0 %vm516_vm4, %v574_v35 }
 0x445   : > { %v618_v36 = vpop.f32.mrf.mxu0 }
 0x446   : > { %v625_v37 = vpack.c.bf16 %v618_v36, %v618_v36 }
 0x447   : > { %v1064_v38 = vpop.f32.mrf.mxu0 }
 0x448   : > { %1069 = vmatmul.mubr.msk.bf16.vlgmr.msra.gmra.mxu1 %vm516_vm4, %v625_v37 }
 0x449   : > { %v621_v39 = vpop.f32.mrf.mxu0 }
 0x44b   : > { %v1065_v40 = vpop.f32.mrf.mxu0 }
 0x508   : > { %v669_v42 = vpop.f32.mrf.mxu1 }
 0x509   : > { %v675_v43 = vadd.f32 %v669_v42, %v624_v41 }
 0x50a   : > { %v1070_v44 = vpop.f32.mrf.mxu1  ;;  %680 = sbr.rel (%p1013_p10) target bundleno = 2354 (0x932), region = 76 }
 0x50b   : > { %676 = vst.msk [vmem:[#allocation3] sm:$0xff] %vm461_vm3, %v675_v43 }
 0x50c   : > { %v672_v45 = vpop.f32.mrf.mxu1 }
 0x50e   : > { %v1071_v46 = vpop.f32.mrf.mxu1 }
 0x50f   : > { %v681_v47 = vld [vmem:[%s1484_s10] sm:$0xff]  ;;  %v1183_v58 = vld [vmem:[%s1604_s6 + $0x8] sm:$0xff]   ;;  %v1314_v59 = vmov 0.0   ;;  %vm1315_vm6 = vmmov 0   ;;  %v717_v6 = vstv %s682_s16  ;;  %v719_v8 = vstv %s1014_s15  ;;  %s1015_s15 = sld [smem:[#allocation4 + $0x2]] }
 0x510   : > { %v1017_v49 = vld [vmem:[%s1603_s5] ss:$0 sm:$0xff]  ;;  %1072 = vmatprep.subr.bf16.mxu0 %v1314_v59  ;;  %1076 = vmatprep.mubr.msk.bf16.mxu0 %vm1315_vm6, %v1314_v59  ;;  %v1185_v12 = vld [vmem:[%s1606_s8 + $0x8] sm:$0xff]   ;;  %v879_v46 = vstv %s1016_s13 }
 0x511   : > { %1073 = vmatpush3.bf16.msra.mxu0 %v1183_v58  ;;  %v1184_v60 = vld [vmem:[%s1604_s6] sm:$0xff]   ;;  %1080 = vmatprep.subr.bf16.mxu1 %v1314_v59 }
 0x512   : > { %v686_v48 = vld [vmem:[#allocation3] sm:$0xff]  ;;  %1074 = vmatprep.subr.bf16.mxu0 %v1314_v59  ;;  %1084 = vmatprep.mubr.msk.bf16.mxu1 %vm1315_vm6, %v1314_v59  ;;  %v1018_v14 = vld [vmem:[%s1605_s7] ss:$0 sm:$0xff] }
 0x513   : > { %v694_v50 = vadd.f32 %v1017_v49, %v686_v48  ;;  %1081 = vmatpush3.bf16.msra.mxu1 %v1185_v12  ;;  %v1186_v13 = vld [vmem:[%s1606_s8] sm:$0xff]  }
 0x514   : > { %1082 = vmatprep.subr.bf16.mxu1 %v1314_v59  ;;  %v1022_v22 = vld [vmem:[%s1607_s9] ss:$0 sm:$0xff] }
 0x515   : > { %v695_v51 = vadd.f32 %v694_v50, %v681_v47  ;;  %1075 = vmatpush3.bf16.msra.mxu0 %v1184_v60  ;;  %v877_v44 = vstv %s1015_s15 }
 0x517   : > { %v696_v52 = vsel %vm461_vm3, %v695_v51, 0.0  ;;  %1083 = vmatpush3.bf16.msra.mxu1 %v1186_v13 }
 0x518   : > { %697 = vadd.xlane.f32.xlu0 %v696_v52 }
 0x5a1   : > { %v698_v53 = vpop.xlane.xlu0 %697 }
 0x5a2   : > { %v700_v54 = vmul.f32 0.03125, %v698_v53 }
 0x5a4   : > { %v701_v55 = vsub.f32 %v695_v51, %v700_v54 }
 0x5a6   : > { %v702_v56 = vmul.f32 %v701_v55, %v701_v55 }
 0x5a8   : > { %v703_v57 = vsel %vm461_vm3, %v702_v56, 0.0 }
 0x5a9   : > { %704 = vadd.xlane.f32.xlu0 %v703_v57 }
 0x632   : > { %v705_v61 = vpop.xlane.xlu0 %704 }
 0x633   : > { %v706_v62 = vmul.f32 0.032258064, %v705_v61 }
 0x635   : > { %1187 = vrsqrt.f32 %v706_v62  ;;  %vm709_vm7 = vcmp.eq.f32.partialorder %v706_v62, inf  ;;  %v712_v1 = vand.u32 2147483648, %v706_v62  ;;  %vm711_vm8 = vcmp.eq.f32.partialorder %v706_v62, 0.0 }
 0x642   : > { %v1188_v63 = vpop.eup %1187 }
 0x643   : > { %v708_v0 = vmul.f32 %v1188_v63, %v706_v62 }
 0x645   : > { %v710_v2 = vsel %vm709_vm7, %v706_v62, %v708_v0 }
 0x646   : > { %v713_v3 = vsel %vm711_vm8, %v712_v1, %v710_v2 }
 0x647   : > { %v714_v4 = vadd.f32 1e-06, %v713_v3 }
 0x649   : > { %1189 = vrcp.f32 %v714_v4 }
 0x656   : > { %v1190_v5 = vpop.eup %1189 }
 0x657   : > { %v716_v7 = vmul.f32 %v1190_v5, %v701_v55 }
 0x659   : > { %v718_v9 = vmul.f32 %v717_v6, %v716_v7 }
 0x65b   : > { %v720_v10 = vadd.f32 %v719_v8, %v718_v9 }
 0x65d   : > { %v721_v11 = vpack.c.bf16 %v720_v10, %v720_v10 }
 0x65f   : > { %1077 = vmatmul.mubr.msk.bf16.vlgmr.msra.gmra.mxu0 %vm461_vm3, %v721_v11 }
 0x71f   : > { %v782_v15 = vpop.f32.mrf.mxu0 }
 0x720   : > { %v783_v16 = vadd.f32 %v1018_v14, %v782_v15 }
 0x721   : > { %v1078_v17 = vpop.f32.mrf.mxu0 }
 0x722   : > { %v788_v18 = vmax.f32 %v783_v16, 0.0 }
 0x723   : > { %v785_v19 = vpop.f32.mrf.mxu0 }
 0x724   : > { %v789_v20 = vpack.c.bf16 %v788_v18, %v788_v18 }
 0x725   : > { %v1079_v21 = vpop.f32.mrf.mxu0 }
 0x726   : > { %1085 = vmatmul.mubr.msk.bf16.vlgmr.msra.gmra.mxu1 %vm461_vm3, %v789_v20 }
 0x7e6   : > { %v850_v23 = vpop.f32.mrf.mxu1 }
 0x7e7   : > { %v851_v24 = vadd.f32 %v1022_v22, %v850_v23 }
 0x7e8   : > { %v1086_v25 = vpop.f32.mrf.mxu1 }
 0x7e9   : > { %v856_v26 = vadd.f32 %v851_v24, %v720_v10 }
 0x7ea   : > { %v853_v27 = vpop.f32.mrf.mxu1 }
 0x7eb   : > { %v857_v28 = vsel %vm461_vm3, %v856_v26, 0.0 }
 0x7ec   : > { %858 = vadd.xlane.f32.xlu1 %v857_v28  ;;  %v1087_v29 = vpop.f32.mrf.mxu1 }
 0x875   : > { %v859_v30 = vpop.xlane.xlu1 %858 }
 0x876   : > { %v860_v31 = vmul.f32 0.03125, %v859_v30 }
 0x878   : > { %v861_v32 = vsub.f32 %v856_v26, %v860_v31 }
 0x87a   : > { %v862_v33 = vmul.f32 %v861_v32, %v861_v32 }
 0x87c   : > { %v863_v34 = vsel %vm461_vm3, %v862_v33, 0.0 }
 0x87d   : > { %864 = vadd.xlane.f32.xlu1 %v863_v34 }
 0x906   : > { %v865_v35 = vpop.xlane.xlu1 %864 }
 0x907   : > { %v866_v36 = vmul.f32 0.032258064, %v865_v35 }
 0x909   : > { %1191 = vrsqrt.f32 %v866_v36  ;;  %vm869_vm9 = vcmp.eq.f32.partialorder %v866_v36, inf  ;;  %v872_v39 = vand.u32 2147483648, %v866_v36  ;;  %vm871_vm10 = vcmp.eq.f32.partialorder %v866_v36, 0.0 }
 0x916   : > { %v1192_v37 = vpop.eup %1191 }
 0x917   : > { %v868_v38 = vmul.f32 %v1192_v37, %v866_v36 }
 0x919   : > { %v870_v40 = vsel %vm869_vm9, %v866_v36, %v868_v38 }
 0x91a   : > { %v873_v41 = vsel %vm871_vm10, %v872_v39, %v870_v40 }
 0x91b   : > { %v874_v42 = vadd.f32 1e-06, %v873_v41 }
 0x91d   : > { %1193 = vrcp.f32 %v874_v42 }
 0x92a   : > { %v1194_v43 = vpop.eup %1193 }
 0x92b   : > { %v876_v45 = vmul.f32 %v1194_v43, %v861_v32 }
 0x92d   : > { %v878_v47 = vmul.f32 %v877_v44, %v876_v45 }
 0x92f   : > { %v880_v48 = vadd.f32 %v879_v46, %v878_v47 }
 0x931   : > { %881 = vst.msk [vmem:[%s414_s28] sm:$0xff] %vm461_vm3, %v880_v48 }
 0x932 PF: > { %s1027_s26 = sshll.u32 %s1294_s21, 7  ;;  %s896_s10 = sshll.u32 %s414_s28, 4  ;;  %s897_s10 = int_to_ptr.vmem [resolvable:$true] %s896_s10 }
 0x933   : > { %s894_s14 = scalar_lea.hbm %s1609_s11, %s1027_s26  ;;  %s883_s27 = scalar_lea.sflag [#allocation5], %s412_s29 }
 0x934   : > { %s1210_s16 = scalar_lea.vmem %s897_s10, 128  ;;  %s1316_s15 = smov [#allocation7]  }
 0x935   : > { %p1211_p12 = scmp.ne.s32.totalorder %s897_s10, %s1210_s16  ;;  %s1214_s13 = sshll.u32 %s1316_s15, 4  ;;  %s1215_s13 = int_to_ptr.vmem [resolvable:$false] %s1214_s13 }
 0x936   : > { %s1216_s0 = scalar_lea.vmem %s1215_s13, 256  ;;  %p1217_p1 = scmp.lt.s32.totalorder %s897_s10, %s1215_s13 }
 0x937   : > { %p1212_p13 = pnand %p1211_p12, %p1427_p3  ;;  %p1218_p2 = scmp.lt.s32.totalorder %s1216_s0, %s1210_s16 }
 0x939   : > { %p1213_p0 = pneg %p1212_p13  ;;  %p1219_p4 = por %p1218_p2, %p1217_p1 }
 0x93b   : > { %p1220_p5 = pnand %p1219_p4, %p1213_p0 }
 0x93d   : > { %1223 = shalt.err (!%p1220_p5)
}
 0x93e   : > { %s1224_s21 = scalar_lea.hbm %s894_s14, 128  ;;  %s1228_s12 = scalar_lea.hbm %s1609_s11, 256 }
 0x93f   : > { %p1225_p6 = scmp.ne.s32.totalorder %s894_s14, %s1224_s21  ;;  %p1229_p11 = scmp.lt.s32.totalorder %s894_s14, %s1609_s11 }
 0x940   : > { %p1230_p9 = scmp.lt.s32.totalorder %s1228_s12, %s1224_s21 }
 0x941   : > { %p1226_p7 = pnand %p1225_p6, %p1427_p3 }
 0x942   : > { %p1231_p10 = por %p1230_p9, %p1229_p11 }
 0x943   : > { %p1227_p8 = pneg %p1226_p7 }
 0x945   : > { %p1232_p12 = pnand %p1231_p10, %p1227_p8 }
 0x947   : > { %1235 = shalt.err (!%p1232_p12)
}
 0x948   : > { %1092 = dma.vmem_to_hbm [thread:$0]  (%p1427_p3), %s897_s10, 128, %s894_s14, %s883_s27  }
 0x949 PF: > { %s1625_s0 = sld [smem:[#allocation13_spill]]  ;;  %p1104_p13 = scmp.ge.s32.totalorder %s1306_s24, 2 }
 0x94a   : > { %s908_s20 = sand.u32 1, %s1278_s17  }
 0x94b   : > { %s909_s16 = scalar_lea.sflag [#allocation5], %s908_s20 }
 0x94f   : > { %p1626_p0 = scmp.ne.s32.totalorder %s1625_s0, 0 }
 0x951   : > { %p1099_p1 = pnand %p1104_p13, %p1626_p0 }
 0x953   : > { %p1100_p2 = pneg %p1099_p1 }
 0x955   : > { %1273 = dma.done.wait (%p1100_p2), %s909_s16, 128  }
 0x956   : > { %1275 = vsyncadd (%p1100_p2), %s909_s16, 4294967168  ;;  %s25_s24 = sadd.s32 1, %s1306_s24   ;;  %s1627_s20 = sld [smem:[#allocation10_spill]] }
 0x957   : > { %p22_p4 = scmp.ge.s32.totalorder %s25_s24, 10   ;;  %s1628_s30 = sld [smem:[#allocation11_spill]] }
 0x958   : > { %s1629_s14 = sld [smem:[#allocation12_spill]]  ;;  %s1630_s17 = smov %s1282_s18 }
 0x959   : > { %s1631_s18 = smov %s1286_s19  ;;  %s1632_s19 = smov %s1457_s22 }
 0x95a   : > { %s1633_s21 = smov %s1302_s23  ;;  %24 = sbr.rel (!%p22_p4) target bundleno = 9 (0x9), region = 118 }
 0x95d   : > { %s1634_s22 = smov %s1628_s30 }
 0x95e   : > { %s1635_s23 = smov %s1629_s14 }
 0x95f   :  { %914 = vsyncpa [#allocation5], 1 }
 0x960   :  { %916 = vsyncpa [#allocation5 + $0x1], 1 }
 0x961   :  { %917 = vsyncpa [#allocation6], 1 }
 0x962   :  { %919 = vsyncpa [#allocation6 + $0x1], 1 }

</bundles_post_ra>
